<compile_context>
chip_gen: v7x
topology: tpu7x:2x2x1
jax: 0.10.0
libtpu: 0.0.40
codegen_flags: <defaults>
</compile_context>

<pallas_src>
import functools
import numpy as np
import jax
import jax.numpy as jnp
from jax.experimental import pallas as pl
from jax.experimental.pallas import tpu as pltpu


# ----------------------------- kernel helpers -----------------------------

def _layer_norm(y, g, b, eps=1e-5):
    mean = jnp.mean(y, axis=-1, keepdims=True)
    var = jnp.mean(jnp.square(y - mean), axis=-1, keepdims=True)
    return (y - mean) * jax.lax.rsqrt(var + eps) * g + b


def _attention_core(q, k, v, mask, wo, bo, g, b, residual, attn_ref,
                    n_heads, d_k, d_v):
    # q: [Sq, H*dk] (already scaled), k: [Sk, H*dk], v: [Sk, H*dv]
    # mask: [Sq, Sk] float32, 1.0 = masked out.  Writes per-head attn to attn_ref.
    ctx_heads = []
    for h in range(n_heads):                      # static loop, H small
        qh = q[:, h * d_k:(h + 1) * d_k]
        kh = k[:, h * d_k:(h + 1) * d_k]
        vh = v[:, h * d_v:(h + 1) * d_v]
        s = jnp.dot(qh, kh.T, preferred_element_type=jnp.float32)
        s = jnp.where(mask > 0.5, jnp.float32(-1e9), s)
        m = jnp.max(s, axis=-1, keepdims=True)
        e = jnp.exp(s - m)
        attn = e * pl.reciprocal(jnp.sum(e, axis=-1, keepdims=True), approx=True)
        attn_ref[h] = attn
        ctx_heads.append(jnp.dot(attn, vh, preferred_element_type=jnp.float32))
    ctx = jnp.concatenate(ctx_heads, axis=-1)     # [Sq, H*dv]
    out = jnp.dot(ctx, wo, preferred_element_type=jnp.float32) + bo
    return _layer_norm(out + residual, g, b)


def _decoder_layer_kernel(n_heads, d_k, d_v,
                          dec_ref, enc_ref, smask_ref, emask_ref,
                          sa_wqkv_ref, sa_bqkv_ref, sa_wo_ref, sa_bo_ref,
                          sa_g_ref, sa_b_ref,
                          ea_wq_ref, ea_bq_ref, ea_wkv_ref, ea_bkv_ref,
                          ea_wo_ref, ea_bo_ref, ea_g_ref, ea_b_ref,
                          f_w1_ref, f_b1_ref, f_w2_ref, f_b2_ref,
                          f_g_ref, f_b_ref,
                          out_ref, sattn_ref, eattn_ref):
    x = dec_ref[...]                   # [S, D]
    enc = enc_ref[...]                 # [Se, D]
    hdk = n_heads * d_k

    # ---- self-attention (fused Q|K|V projection: one matmul) ----
    qkv = (jnp.dot(x, sa_wqkv_ref[...], preferred_element_type=jnp.float32)
           + sa_bqkv_ref[...])
    q = qkv[:, :hdk]
    k = qkv[:, hdk:2 * hdk]
    v = qkv[:, 2 * hdk:]
    x1 = _attention_core(q, k, v, smask_ref[...],
                         sa_wo_ref[...], sa_bo_ref[...], sa_g_ref[...], sa_b_ref[...],
                         x, sattn_ref, n_heads, d_k, d_v)

    # ---- enc-dec attention (fused K|V projection on encoder outputs) ----
    q2 = (jnp.dot(x1, ea_wq_ref[...], preferred_element_type=jnp.float32)
          + ea_bq_ref[...])
    kv = (jnp.dot(enc, ea_wkv_ref[...], preferred_element_type=jnp.float32)
          + ea_bkv_ref[...])
    k2 = kv[:, :hdk]
    v2 = kv[:, hdk:]
    x2 = _attention_core(q2, k2, v2, emask_ref[...],
                         ea_wo_ref[...], ea_bo_ref[...], ea_g_ref[...], ea_b_ref[...],
                         x1, eattn_ref, n_heads, d_k, d_v)

    # ---- position-wise FFN (Conv1d kernel_size=1 == per-position linear) ----
    h1 = jnp.maximum(
        jnp.dot(x2, f_w1_ref[...], preferred_element_type=jnp.float32) + f_b1_ref[...],
        0.0)
    y = jnp.dot(h1, f_w2_ref[...], preferred_element_type=jnp.float32) + f_b2_ref[...]
    out_ref[...] = _layer_norm(y + x2, f_g_ref[...], f_b_ref[...])


# ------------------------------- wrapper -------------------------------

def decoder_layer(params, dec_inputs, enc_outputs, dec_self_mask, dec_enc_mask,
                  *, n_heads, d_k, d_v):
    B, S, D = dec_inputs.shape
    Se = enc_outputs.shape[1]

    # Reference uses ScaledDotProductAttention() default d_k=64 -> /sqrt(64);
    # fold the scale into the Q projection so there's no divide in the kernel.
    scale = jnp.float32(1.0 / np.sqrt(64.0))
    sa, ea, ff = params["self_attn"], params["enc_attn"], params["ffn"]

    sa_wqkv = jnp.concatenate([sa["wq"] * scale, sa["wk"], sa["wv"]], axis=1)
    sa_bqkv = jnp.concatenate([sa["bq"] * scale, sa["bk"], sa["bv"]]).reshape(1, -1)
    ea_wq = ea["wq"] * scale
    ea_bq = (ea["bq"] * scale).reshape(1, -1)
    ea_wkv = jnp.concatenate([ea["wk"], ea["wv"]], axis=1)
    ea_bkv = jnp.concatenate([ea["bk"], ea["bv"]]).reshape(1, -1)

    smask = dec_self_mask.astype(jnp.float32)
    emask = dec_enc_mask.astype(jnp.float32)

    weights = [
        sa_wqkv, sa_bqkv, sa["wo"], sa["bo"].reshape(1, -1),
        sa["ln_g"].reshape(1, -1), sa["ln_b"].reshape(1, -1),
        ea_wq, ea_bq, ea_wkv, ea_bkv, ea["wo"], ea["bo"].reshape(1, -1),
        ea["ln_g"].reshape(1, -1), ea["ln_b"].reshape(1, -1),
        ff["w1"], ff["b1"].reshape(1, -1), ff["w2"], ff["b2"].reshape(1, -1),
        ff["ln_g"].reshape(1, -1), ff["ln_b"].reshape(1, -1),
    ]

    def rep(arr):  # whole-array block, constant index -> stays VMEM-resident
        return pl.BlockSpec(arr.shape, lambda b, _n=arr.ndim: (0,) * _n)

    in_specs = [
        pl.BlockSpec((None, S, D), lambda b: (b, 0, 0)),     # dec_inputs
        pl.BlockSpec((None, Se, D), lambda b: (b, 0, 0)),    # enc_outputs
        pl.BlockSpec((None, S, S), lambda b: (b, 0, 0)),     # self mask
        pl.BlockSpec((None, S, Se), lambda b: (b, 0, 0)),    # enc mask
    ] + [rep(w) for w in weights]

    out_specs = [
        pl.BlockSpec((None, S, D), lambda b: (b, 0, 0)),
        pl.BlockSpec((None, n_heads, S, S), lambda b: (b, 0, 0, 0)),
        pl.BlockSpec((None, n_heads, S, Se), lambda b: (b, 0, 0, 0)),
    ]
    out_shape = [
        jax.ShapeDtypeStruct((B, S, D), jnp.float32),
        jax.ShapeDtypeStruct((B, n_heads, S, S), jnp.float32),
        jax.ShapeDtypeStruct((B, n_heads, S, Se), jnp.float32),
    ]

    kernel = functools.partial(_decoder_layer_kernel, n_heads, d_k, d_v)
    dec_out, self_attn, enc_attn = pl.pallas_call(
        kernel,
        grid=(B,),
        in_specs=in_specs,
        out_specs=out_specs,
        out_shape=out_shape,
        compiler_params=pltpu.CompilerParams(
            dimension_semantics=("parallel",)),
    )(dec_inputs.astype(jnp.float32), enc_outputs.astype(jnp.float32),
      smask, emask, *weights)
    return dec_out, self_attn, enc_attn


# -------------------------- pure-JAX reference --------------------------

def decoder_layer_ref(params, dec_inputs, enc_outputs, smask, emask,
                      *, n_heads, d_k, d_v):
    def ln(y, g, b):
        mean = y.mean(-1, keepdims=True)
        var = ((y - mean) ** 2).mean(-1, keepdims=True)
        return (y - mean) * jax.lax.rsqrt(var + 1e-5) * g + b

    def mha(p, Q, K, V, mask):
        B, Sq, _ = Q.shape
        Sk = K.shape[1]
        q = (Q @ p["wq"] + p["bq"]).reshape(B, Sq, n_heads, d_k).transpose(0, 2, 1, 3)
        k = (K @ p["wk"] + p["bk"]).reshape(B, Sk, n_heads, d_k).transpose(0, 2, 1, 3)
        v = (V @ p["wv"] + p["bv"]).reshape(B, Sk, n_heads, d_v).transpose(0, 2, 1, 3)
        scores = jnp.einsum("bhqd,bhkd->bhqk", q, k) / np.sqrt(64.0)
        scores = jnp.where(mask[:, None, :, :], jnp.float32(-1e9), scores)
        attn = jax.nn.softmax(scores, axis=-1)
        ctx = jnp.einsum("bhqk,bhkd->bhqd", attn, v)
        ctx = ctx.transpose(0, 2, 1, 3).reshape(B, Sq, n_heads * d_v)
        out = ctx @ p["wo"] + p["bo"]
        return ln(out + Q, p["ln_g"], p["ln_b"]), attn

    x1, sa = mha(params["self_attn"], dec_inputs, dec_inputs, dec_inputs, smask)
    x2, ea = mha(params["enc_attn"], x1, enc_outputs, enc_outputs, emask)
    ff = params["ffn"]
    h = jnp.maximum(x2 @ ff["w1"] + ff["b1"], 0.0)
    y = h @ ff["w2"] + ff["b2"] + x2
    return ln(y, ff["ln_g"], ff["ln_b"]), sa, ea


# ----------------------------- param init -----------------------------

def init_decoder_layer_params(key, d_model, d_ff, d_k, d_v, n_heads):
    keys = iter(jax.random.split(key, 32))

    def nrm(shape, scale=0.05):
        return scale * jax.random.normal(next(keys), shape, jnp.float32)

    def mha():
        return {
            "wq": nrm((d_model, d_k * n_heads)), "bq": nrm((d_k * n_heads,)),
            "wk": nrm((d_model, d_k * n_heads)), "bk": nrm((d_k * n_heads,)),
            "wv": nrm((d_model, d_v * n_heads)), "bv": nrm((d_v * n_heads,)),
            "wo": nrm((d_v * n_heads, d_model)), "bo": nrm((d_model,)),
            "ln_g": jnp.ones((d_model,), jnp.float32),
            "ln_b": jnp.zeros((d_model,), jnp.float32),
        }

    return {
        "self_attn": mha(),
        "enc_attn": mha(),
        "ffn": {
            "w1": nrm((d_model, d_ff)), "b1": nrm((d_ff,)),
            "w2": nrm((d_ff, d_model)), "b2": nrm((d_model,)),
            "ln_g": jnp.ones((d_model,), jnp.float32),
            "ln_b": jnp.zeros((d_model,), jnp.float32),
        },
    }


# --------------------------------- main ---------------------------------

if __name__ == "__main__":
    d_model, d_ff, d_k, d_v, n_heads = 32, 64, 16, 16, 4
    B, S, Se = 2, 8, 8

    key = jax.random.PRNGKey(0)
    kp, kd, ke = jax.random.split(key, 3)
    params = init_decoder_layer_params(kp, d_model, d_ff, d_k, d_v, n_heads)

    dec_inputs = jax.random.normal(kd, (B, S, d_model), jnp.float32)
    enc_outputs = jax.random.normal(ke, (B, Se, d_model), jnp.float32)

    # Standard decoder masks: causal self-attention mask, no encoder padding.
    causal = jnp.triu(jnp.ones((S, S), jnp.float32), k=1) > 0
    dec_self_mask = jnp.broadcast_to(causal, (B, S, S))
    dec_enc_mask = jnp.zeros((B, S, Se), jnp.bool_)

    out, self_attn, enc_attn = decoder_layer(
        params, dec_inputs, enc_outputs, dec_self_mask, dec_enc_mask,
        n_heads=n_heads, d_k=d_k, d_v=d_v)
    jax.block_until_ready(out)
    jax.block_until_ready(self_attn)
    jax.block_until_ready(enc_attn)

    # Correctness check against a pure-JAX reference of the PyTorch module.
    ref_out, ref_sa, ref_ea = decoder_layer_ref(
        params, dec_inputs, enc_outputs, dec_self_mask, dec_enc_mask,
        n_heads=n_heads, d_k=d_k, d_v=d_v)
    np.testing.assert_allclose(np.asarray(out), np.asarray(ref_out),
                               atol=2e-3, rtol=2e-3)
    np.testing.assert_allclose(np.asarray(self_attn), np.asarray(ref_sa),
                               atol=2e-3, rtol=2e-3)
    np.testing.assert_allclose(np.asarray(enc_attn), np.asarray(ref_ea),
                               atol=2e-3, rtol=2e-3)

    assert out.shape == (B, S, d_model)
    assert self_attn.shape == (B, n_heads, S, S)
    assert enc_attn.shape == (B, n_heads, S, Se)
    print("KERNEL_OK")
</pallas_src>

<mosaic_0001>
module attributes {stable_mosaic.version = 11 : i64} {
  func.func @_decoder_layer_kernel(%arg0: i32, %arg1: memref<1x8x32xf32, #tpu.memory_space<vmem>>, %arg2: memref<1x8x32xf32, #tpu.memory_space<vmem>>, %arg3: memref<1x8x8xf32, #tpu.memory_space<vmem>>, %arg4: memref<1x8x8xf32, #tpu.memory_space<vmem>>, %arg5: memref<32x192xf32, #tpu.memory_space<vmem>>, %arg6: memref<1x192xf32, #tpu.memory_space<vmem>>, %arg7: memref<64x32xf32, #tpu.memory_space<vmem>>, %arg8: memref<1x32xf32, #tpu.memory_space<vmem>>, %arg9: memref<1x32xf32, #tpu.memory_space<vmem>>, %arg10: memref<1x32xf32, #tpu.memory_space<vmem>>, %arg11: memref<32x64xf32, #tpu.memory_space<vmem>>, %arg12: memref<1x64xf32, #tpu.memory_space<vmem>>, %arg13: memref<32x128xf32, #tpu.memory_space<vmem>>, %arg14: memref<1x128xf32, #tpu.memory_space<vmem>>, %arg15: memref<64x32xf32, #tpu.memory_space<vmem>>, %arg16: memref<1x32xf32, #tpu.memory_space<vmem>>, %arg17: memref<1x32xf32, #tpu.memory_space<vmem>>, %arg18: memref<1x32xf32, #tpu.memory_space<vmem>>, %arg19: memref<32x64xf32, #tpu.memory_space<vmem>>, %arg20: memref<1x64xf32, #tpu.memory_space<vmem>>, %arg21: memref<64x32xf32, #tpu.memory_space<vmem>>, %arg22: memref<1x32xf32, #tpu.memory_space<vmem>>, %arg23: memref<1x32xf32, #tpu.memory_space<vmem>>, %arg24: memref<1x32xf32, #tpu.memory_space<vmem>>, %arg25: memref<1x8x32xf32, #tpu.memory_space<vmem>>, %arg26: memref<1x4x8x8xf32, #tpu.memory_space<vmem>>, %arg27: memref<1x4x8x8xf32, #tpu.memory_space<vmem>>) attributes {dimension_semantics = [#tpu.dimension_semantics<parallel>], iteration_bounds = array<i64: 2>, scalar_prefetch = 0 : i64, scratch_operands = 0 : i64, tpu.core_type = #tpu.core_type<tc>, window_params = [{transform_indices = @transform_0, window_bounds = array<i64: 1, 8, 32>}, {transform_indices = @transform_1, window_bounds = array<i64: 1, 8, 32>}, {transform_indices = @transform_2, window_bounds = array<i64: 1, 8, 8>}, {transform_indices = @transform_3, window_bounds = array<i64: 1, 8, 8>}, {pipeline_mode = #tpu.pipeline_mode<synchronous>, transform_indices = @transform_4, window_bounds = array<i64: 32, 192>}, {pipeline_mode = #tpu.pipeline_mode<synchronous>, transform_indices = @transform_5, window_bounds = array<i64: 1, 192>}, {pipeline_mode = #tpu.pipeline_mode<synchronous>, transform_indices = @transform_6, window_bounds = array<i64: 64, 32>}, {pipeline_mode = #tpu.pipeline_mode<synchronous>, transform_indices = @transform_7, window_bounds = array<i64: 1, 32>}, {pipeline_mode = #tpu.pipeline_mode<synchronous>, transform_indices = @transform_8, window_bounds = array<i64: 1, 32>}, {pipeline_mode = #tpu.pipeline_mode<synchronous>, transform_indices = @transform_9, window_bounds = array<i64: 1, 32>}, {pipeline_mode = #tpu.pipeline_mode<synchronous>, transform_indices = @transform_10, window_bounds = array<i64: 32, 64>}, {pipeline_mode = #tpu.pipeline_mode<synchronous>, transform_indices = @transform_11, window_bounds = array<i64: 1, 64>}, {pipeline_mode = #tpu.pipeline_mode<synchronous>, transform_indices = @transform_12, window_bounds = array<i64: 32, 128>}, {pipeline_mode = #tpu.pipeline_mode<synchronous>, transform_indices = @transform_13, window_bounds = array<i64: 1, 128>}, {pipeline_mode = #tpu.pipeline_mode<synchronous>, transform_indices = @transform_14, window_bounds = array<i64: 64, 32>}, {pipeline_mode = #tpu.pipeline_mode<synchronous>, transform_indices = @transform_15, window_bounds = array<i64: 1, 32>}, {pipeline_mode = #tpu.pipeline_mode<synchronous>, transform_indices = @transform_16, window_bounds = array<i64: 1, 32>}, {pipeline_mode = #tpu.pipeline_mode<synchronous>, transform_indices = @transform_17, window_bounds = array<i64: 1, 32>}, {pipeline_mode = #tpu.pipeline_mode<synchronous>, transform_indices = @transform_18, window_bounds = array<i64: 32, 64>}, {pipeline_mode = #tpu.pipeline_mode<synchronous>, transform_indices = @transform_19, window_bounds = array<i64: 1, 64>}, {pipeline_mode = #tpu.pipeline_mode<synchronous>, transform_indices = @transform_20, window_bounds = array<i64: 64, 32>}, {pipeline_mode = #tpu.pipeline_mode<synchronous>, transform_indices = @transform_21, window_bounds = array<i64: 1, 32>}, {pipeline_mode = #tpu.pipeline_mode<synchronous>, transform_indices = @transform_22, window_bounds = array<i64: 1, 32>}, {pipeline_mode = #tpu.pipeline_mode<synchronous>, transform_indices = @transform_23, window_bounds = array<i64: 1, 32>}, {transform_indices = @transform_24, window_bounds = array<i64: 1, 8, 32>}, {transform_indices = @transform_25, window_bounds = array<i64: 1, 4, 8, 8>}, {transform_indices = @transform_26, window_bounds = array<i64: 1, 4, 8, 8>}]} {
    %c0 = arith.constant 0 : index
    %c0_0 = arith.constant 0 : index
    %c0_1 = arith.constant 0 : index
    %0 = vector.load %arg1[%c0, %c0_0, %c0_1] : memref<1x8x32xf32, #tpu.memory_space<vmem>>, vector<1x8x32xf32>
    %1 = vector.shape_cast %0 : vector<1x8x32xf32> to vector<8x32xf32>
    %c0_2 = arith.constant 0 : index
    %c0_3 = arith.constant 0 : index
    %c0_4 = arith.constant 0 : index
    %2 = vector.load %arg2[%c0_2, %c0_3, %c0_4] : memref<1x8x32xf32, #tpu.memory_space<vmem>>, vector<1x8x32xf32>
    %3 = vector.shape_cast %2 : vector<1x8x32xf32> to vector<8x32xf32>
    %c0_5 = arith.constant 0 : index
    %c0_6 = arith.constant 0 : index
    %4 = vector.load %arg5[%c0_5, %c0_6] : memref<32x192xf32, #tpu.memory_space<vmem>>, vector<32x192xf32>
    %cst = arith.constant dense<0.000000e+00> : vector<8x192xf32>
    %5 = tpu.matmul %1, %4, %cst {dimension_numbers = #tpu.dot_dimension_numbers<[1], [0], [0], [1], [0, 0, 1, 1], [], []>} : vector<8x32xf32>, vector<32x192xf32>, vector<8x192xf32> -> vector<8x192xf32>
    %c0_7 = arith.constant 0 : index
    %c0_8 = arith.constant 0 : index
    %6 = vector.load %arg6[%c0_7, %c0_8] : memref<1x192xf32, #tpu.memory_space<vmem>>, vector<1x192xf32>
    %7 = vector.broadcast %6 : vector<1x192xf32> to vector<8x192xf32>
    %8 = arith.addf %5, %7 : vector<8x192xf32>
    %9 = vector.extract_strided_slice %8 {offsets = [0, 0], sizes = [8, 64], strides = [1, 1]} : vector<8x192xf32> to vector<8x64xf32>
    %10 = vector.extract_strided_slice %8 {offsets = [0, 64], sizes = [8, 64], strides = [1, 1]} : vector<8x192xf32> to vector<8x64xf32>
    %11 = vector.extract_strided_slice %8 {offsets = [0, 128], sizes = [8, 64], strides = [1, 1]} : vector<8x192xf32> to vector<8x64xf32>
    %c0_9 = arith.constant 0 : index
    %c0_10 = arith.constant 0 : index
    %c0_11 = arith.constant 0 : index
    %12 = vector.load %arg3[%c0_9, %c0_10, %c0_11] : memref<1x8x8xf32, #tpu.memory_space<vmem>>, vector<1x8x8xf32>
    %13 = vector.shape_cast %12 : vector<1x8x8xf32> to vector<8x8xf32>
    %c0_12 = arith.constant 0 : index
    %c0_13 = arith.constant 0 : index
    %14 = vector.load %arg7[%c0_12, %c0_13] : memref<64x32xf32, #tpu.memory_space<vmem>>, vector<64x32xf32>
    %c0_14 = arith.constant 0 : index
    %c0_15 = arith.constant 0 : index
    %15 = vector.load %arg8[%c0_14, %c0_15] : memref<1x32xf32, #tpu.memory_space<vmem>>, vector<1x32xf32>
    %c0_16 = arith.constant 0 : index
    %c0_17 = arith.constant 0 : index
    %16 = vector.load %arg9[%c0_16, %c0_17] : memref<1x32xf32, #tpu.memory_space<vmem>>, vector<1x32xf32>
    %c0_18 = arith.constant 0 : index
    %c0_19 = arith.constant 0 : index
    %17 = vector.load %arg10[%c0_18, %c0_19] : memref<1x32xf32, #tpu.memory_space<vmem>>, vector<1x32xf32>
    %18 = vector.extract_strided_slice %9 {offsets = [0, 0], sizes = [8, 16], strides = [1, 1]} : vector<8x64xf32> to vector<8x16xf32>
    %19 = vector.extract_strided_slice %10 {offsets = [0, 0], sizes = [8, 16], strides = [1, 1]} : vector<8x64xf32> to vector<8x16xf32>
    %20 = vector.extract_strided_slice %11 {offsets = [0, 0], sizes = [8, 16], strides = [1, 1]} : vector<8x64xf32> to vector<8x16xf32>
    %21 = tpu.transpose %19, [1, 0] : vector<8x16xf32> -> vector<16x8xf32>
    %cst_20 = arith.constant dense<0.000000e+00> : vector<8x8xf32>
    %22 = tpu.matmul %18, %21, %cst_20 {dimension_numbers = #tpu.dot_dimension_numbers<[1], [0], [0], [1], [0, 0, 1, 1], [], []>} : vector<8x16xf32>, vector<16x8xf32>, vector<8x8xf32> -> vector<8x8xf32>
    %cst_21 = arith.constant 5.000000e-01 : f32
    %23 = vector.broadcast %cst_21 : f32 to vector<8x8xf32>
    %24 = arith.cmpf ogt, %13, %23 : vector<8x8xf32>
    %cst_22 = arith.constant -1.000000e+09 : f32
    %25 = vector.broadcast %cst_22 : f32 to vector<8x8xf32>
    %26 = arith.select %24, %25, %22 : vector<8x8xi1>, vector<8x8xf32>
    %cst_23 = arith.constant dense<0xFF800000> : vector<8xf32>
    %27 = vector.multi_reduction <maximumf>, %26, %cst_23 [1] : vector<8x8xf32> to vector<8xf32>
    %28 = vector.shape_cast %27 : vector<8xf32> to vector<8x1xf32>
    %29 = vector.broadcast %28 : vector<8x1xf32> to vector<8x8xf32>
    %30 = arith.subf %26, %29 : vector<8x8xf32>
    %31 = math.exp %30 : vector<8x8xf32>
    %cst_24 = arith.constant dense<0.000000e+00> : vector<8xf32>
    %32 = vector.multi_reduction <add>, %31, %cst_24 [1] : vector<8x8xf32> to vector<8xf32>
    %33 = vector.shape_cast %32 : vector<8xf32> to vector<8x1xf32>
    %34 = tpu.reciprocal %33 {approx = true} : vector<8x1xf32> -> vector<8x1xf32>
    %35 = vector.broadcast %34 : vector<8x1xf32> to vector<8x8xf32>
    %36 = arith.mulf %31, %35 : vector<8x8xf32>
    %c0_25 = arith.constant 0 : index
    %c0_26 = arith.constant 0 : index
    %c0_27 = arith.constant 0 : index
    %c0_28 = arith.constant 0 : index
    %37 = vector.load %arg26[%c0_25, %c0_26, %c0_27, %c0_28] : memref<1x4x8x8xf32, #tpu.memory_space<vmem>>, vector<1x1x8x8xf32>
    %38 = vector.shape_cast %37 : vector<1x1x8x8xf32> to vector<8x8xf32>
    %39 = vector.shape_cast %36 : vector<8x8xf32> to vector<1x1x8x8xf32>
    tpu.vector_store %arg26[%c0_25, %c0_26, %c0_27, %c0_28], %39 {strides = array<i32>} : memref<1x4x8x8xf32, #tpu.memory_space<vmem>>, vector<1x1x8x8xf32>,
    %cst_29 = arith.constant dense<0.000000e+00> : vector<8x16xf32>
    %40 = tpu.matmul %36, %20, %cst_29 {dimension_numbers = #tpu.dot_dimension_numbers<[1], [0], [0], [1], [0, 0, 1, 1], [], []>} : vector<8x8xf32>, vector<8x16xf32>, vector<8x16xf32> -> vector<8x16xf32>
    %41 = vector.extract_strided_slice %9 {offsets = [0, 16], sizes = [8, 16], strides = [1, 1]} : vector<8x64xf32> to vector<8x16xf32>
    %42 = vector.extract_strided_slice %10 {offsets = [0, 16], sizes = [8, 16], strides = [1, 1]} : vector<8x64xf32> to vector<8x16xf32>
    %43 = vector.extract_strided_slice %11 {offsets = [0, 16], sizes = [8, 16], strides = [1, 1]} : vector<8x64xf32> to vector<8x16xf32>
    %44 = tpu.transpose %42, [1, 0] : vector<8x16xf32> -> vector<16x8xf32>
    %cst_30 = arith.constant dense<0.000000e+00> : vector<8x8xf32>
    %45 = tpu.matmul %41, %44, %cst_30 {dimension_numbers = #tpu.dot_dimension_numbers<[1], [0], [0], [1], [0, 0, 1, 1], [], []>} : vector<8x16xf32>, vector<16x8xf32>, vector<8x8xf32> -> vector<8x8xf32>
    %cst_31 = arith.constant 5.000000e-01 : f32
    %46 = vector.broadcast %cst_31 : f32 to vector<8x8xf32>
    %47 = arith.cmpf ogt, %13, %46 : vector<8x8xf32>
    %cst_32 = arith.constant -1.000000e+09 : f32
    %48 = vector.broadcast %cst_32 : f32 to vector<8x8xf32>
    %49 = arith.select %47, %48, %45 : vector<8x8xi1>, vector<8x8xf32>
    %cst_33 = arith.constant dense<0xFF800000> : vector<8xf32>
    %50 = vector.multi_reduction <maximumf>, %49, %cst_33 [1] : vector<8x8xf32> to vector<8xf32>
    %51 = vector.shape_cast %50 : vector<8xf32> to vector<8x1xf32>
    %52 = vector.broadcast %51 : vector<8x1xf32> to vector<8x8xf32>
    %53 = arith.subf %49, %52 : vector<8x8xf32>
    %54 = math.exp %53 : vector<8x8xf32>
    %cst_34 = arith.constant dense<0.000000e+00> : vector<8xf32>
    %55 = vector.multi_reduction <add>, %54, %cst_34 [1] : vector<8x8xf32> to vector<8xf32>
    %56 = vector.shape_cast %55 : vector<8xf32> to vector<8x1xf32>
    %57 = tpu.reciprocal %56 {approx = true} : vector<8x1xf32> -> vector<8x1xf32>
    %58 = vector.broadcast %57 : vector<8x1xf32> to vector<8x8xf32>
    %59 = arith.mulf %54, %58 : vector<8x8xf32>
    %c0_35 = arith.constant 0 : index
    %c1 = arith.constant 1 : index
    %c0_36 = arith.constant 0 : index
    %c0_37 = arith.constant 0 : index
    %60 = vector.load %arg26[%c0_35, %c1, %c0_36, %c0_37] : memref<1x4x8x8xf32, #tpu.memory_space<vmem>>, vector<1x1x8x8xf32>
    %61 = vector.shape_cast %60 : vector<1x1x8x8xf32> to vector<8x8xf32>
    %62 = vector.shape_cast %59 : vector<8x8xf32> to vector<1x1x8x8xf32>
    tpu.vector_store %arg26[%c0_35, %c1, %c0_36, %c0_37], %62 {strides = array<i32>} : memref<1x4x8x8xf32, #tpu.memory_space<vmem>>, vector<1x1x8x8xf32>,
    %cst_38 = arith.constant dense<0.000000e+00> : vector<8x16xf32>
    %63 = tpu.matmul %59, %43, %cst_38 {dimension_numbers = #tpu.dot_dimension_numbers<[1], [0], [0], [1], [0, 0, 1, 1], [], []>} : vector<8x8xf32>, vector<8x16xf32>, vector<8x16xf32> -> vector<8x16xf32>
    %64 = vector.extract_strided_slice %9 {offsets = [0, 32], sizes = [8, 16], strides = [1, 1]} : vector<8x64xf32> to vector<8x16xf32>
    %65 = vector.extract_strided_slice %10 {offsets = [0, 32], sizes = [8, 16], strides = [1, 1]} : vector<8x64xf32> to vector<8x16xf32>
    %66 = vector.extract_strided_slice %11 {offsets = [0, 32], sizes = [8, 16], strides = [1, 1]} : vector<8x64xf32> to vector<8x16xf32>
    %67 = tpu.transpose %65, [1, 0] : vector<8x16xf32> -> vector<16x8xf32>
    %cst_39 = arith.constant dense<0.000000e+00> : vector<8x8xf32>
    %68 = tpu.matmul %64, %67, %cst_39 {dimension_numbers = #tpu.dot_dimension_numbers<[1], [0], [0], [1], [0, 0, 1, 1], [], []>} : vector<8x16xf32>, vector<16x8xf32>, vector<8x8xf32> -> vector<8x8xf32>
    %cst_40 = arith.constant 5.000000e-01 : f32
    %69 = vector.broadcast %cst_40 : f32 to vector<8x8xf32>
    %70 = arith.cmpf ogt, %13, %69 : vector<8x8xf32>
    %cst_41 = arith.constant -1.000000e+09 : f32
    %71 = vector.broadcast %cst_41 : f32 to vector<8x8xf32>
    %72 = arith.select %70, %71, %68 : vector<8x8xi1>, vector<8x8xf32>
    %cst_42 = arith.constant dense<0xFF800000> : vector<8xf32>
    %73 = vector.multi_reduction <maximumf>, %72, %cst_42 [1] : vector<8x8xf32> to vector<8xf32>
    %74 = vector.shape_cast %73 : vector<8xf32> to vector<8x1xf32>
    %75 = vector.broadcast %74 : vector<8x1xf32> to vector<8x8xf32>
    %76 = arith.subf %72, %75 : vector<8x8xf32>
    %77 = math.exp %76 : vector<8x8xf32>
    %cst_43 = arith.constant dense<0.000000e+00> : vector<8xf32>
    %78 = vector.multi_reduction <add>, %77, %cst_43 [1] : vector<8x8xf32> to vector<8xf32>
    %79 = vector.shape_cast %78 : vector<8xf32> to vector<8x1xf32>
    %80 = tpu.reciprocal %79 {approx = true} : vector<8x1xf32> -> vector<8x1xf32>
    %81 = vector.broadcast %80 : vector<8x1xf32> to vector<8x8xf32>
    %82 = arith.mulf %77, %81 : vector<8x8xf32>
    %c0_44 = arith.constant 0 : index
    %c2 = arith.constant 2 : index
    %c0_45 = arith.constant 0 : index
    %c0_46 = arith.constant 0 : index
    %83 = vector.load %arg26[%c0_44, %c2, %c0_45, %c0_46] : memref<1x4x8x8xf32, #tpu.memory_space<vmem>>, vector<1x1x8x8xf32>
    %84 = vector.shape_cast %83 : vector<1x1x8x8xf32> to vector<8x8xf32>
    %85 = vector.shape_cast %82 : vector<8x8xf32> to vector<1x1x8x8xf32>
    tpu.vector_store %arg26[%c0_44, %c2, %c0_45, %c0_46], %85 {strides = array<i32>} : memref<1x4x8x8xf32, #tpu.memory_space<vmem>>, vector<1x1x8x8xf32>,
    %cst_47 = arith.constant dense<0.000000e+00> : vector<8x16xf32>
    %86 = tpu.matmul %82, %66, %cst_47 {dimension_numbers = #tpu.dot_dimension_numbers<[1], [0], [0], [1], [0, 0, 1, 1], [], []>} : vector<8x8xf32>, vector<8x16xf32>, vector<8x16xf32> -> vector<8x16xf32>
    %87 = vector.extract_strided_slice %9 {offsets = [0, 48], sizes = [8, 16], strides = [1, 1]} : vector<8x64xf32> to vector<8x16xf32>
    %88 = vector.extract_strided_slice %10 {offsets = [0, 48], sizes = [8, 16], strides = [1, 1]} : vector<8x64xf32> to vector<8x16xf32>
    %89 = vector.extract_strided_slice %11 {offsets = [0, 48], sizes = [8, 16], strides = [1, 1]} : vector<8x64xf32> to vector<8x16xf32>
    %90 = tpu.transpose %88, [1, 0] : vector<8x16xf32> -> vector<16x8xf32>
    %cst_48 = arith.constant dense<0.000000e+00> : vector<8x8xf32>
    %91 = tpu.matmul %87, %90, %cst_48 {dimension_numbers = #tpu.dot_dimension_numbers<[1], [0], [0], [1], [0, 0, 1, 1], [], []>} : vector<8x16xf32>, vector<16x8xf32>, vector<8x8xf32> -> vector<8x8xf32>
    %cst_49 = arith.constant 5.000000e-01 : f32
    %92 = vector.broadcast %cst_49 : f32 to vector<8x8xf32>
    %93 = arith.cmpf ogt, %13, %92 : vector<8x8xf32>
    %cst_50 = arith.constant -1.000000e+09 : f32
    %94 = vector.broadcast %cst_50 : f32 to vector<8x8xf32>
    %95 = arith.select %93, %94, %91 : vector<8x8xi1>, vector<8x8xf32>
    %cst_51 = arith.constant dense<0xFF800000> : vector<8xf32>
    %96 = vector.multi_reduction <maximumf>, %95, %cst_51 [1] : vector<8x8xf32> to vector<8xf32>
    %97 = vector.shape_cast %96 : vector<8xf32> to vector<8x1xf32>
    %98 = vector.broadcast %97 : vector<8x1xf32> to vector<8x8xf32>
    %99 = arith.subf %95, %98 : vector<8x8xf32>
    %100 = math.exp %99 : vector<8x8xf32>
    %cst_52 = arith.constant dense<0.000000e+00> : vector<8xf32>
    %101 = vector.multi_reduction <add>, %100, %cst_52 [1] : vector<8x8xf32> to vector<8xf32>
    %102 = vector.shape_cast %101 : vector<8xf32> to vector<8x1xf32>
    %103 = tpu.reciprocal %102 {approx = true} : vector<8x1xf32> -> vector<8x1xf32>
    %104 = vector.broadcast %103 : vector<8x1xf32> to vector<8x8xf32>
    %105 = arith.mulf %100, %104 : vector<8x8xf32>
    %c0_53 = arith.constant 0 : index
    %c3 = arith.constant 3 : index
    %c0_54 = arith.constant 0 : index
    %c0_55 = arith.constant 0 : index
    %106 = vector.load %arg26[%c0_53, %c3, %c0_54, %c0_55] : memref<1x4x8x8xf32, #tpu.memory_space<vmem>>, vector<1x1x8x8xf32>
    %107 = vector.shape_cast %106 : vector<1x1x8x8xf32> to vector<8x8xf32>
    %108 = vector.shape_cast %105 : vector<8x8xf32> to vector<1x1x8x8xf32>
    tpu.vector_store %arg26[%c0_53, %c3, %c0_54, %c0_55], %108 {strides = array<i32>} : memref<1x4x8x8xf32, #tpu.memory_space<vmem>>, vector<1x1x8x8xf32>,
    %cst_56 = arith.constant dense<0.000000e+00> : vector<8x16xf32>
    %109 = tpu.matmul %105, %89, %cst_56 {dimension_numbers = #tpu.dot_dimension_numbers<[1], [0], [0], [1], [0, 0, 1, 1], [], []>} : vector<8x8xf32>, vector<8x16xf32>, vector<8x16xf32> -> vector<8x16xf32>
    %110 = tpu.concatenate %40, %63, %86, %109 in 1 : vector<8x16xf32>, vector<8x16xf32>, vector<8x16xf32>, vector<8x16xf32> -> vector<8x64xf32>
    %cst_57 = arith.constant dense<0.000000e+00> : vector<8x32xf32>
    %111 = tpu.matmul %110, %14, %cst_57 {dimension_numbers = #tpu.dot_dimension_numbers<[1], [0], [0], [1], [0, 0, 1, 1], [], []>} : vector<8x64xf32>, vector<64x32xf32>, vector<8x32xf32> -> vector<8x32xf32>
    %112 = vector.broadcast %15 : vector<1x32xf32> to vector<8x32xf32>
    %113 = arith.addf %111, %112 : vector<8x32xf32>
    %114 = arith.addf %113, %1 : vector<8x32xf32>
    %cst_58 = arith.constant dense<0.000000e+00> : vector<8xf32>
    %115 = vector.multi_reduction <add>, %114, %cst_58 [1] : vector<8x32xf32> to vector<8xf32>
    %116 = vector.shape_cast %115 : vector<8xf32> to vector<8x1xf32>
    %cst_59 = arith.constant 3.200000e+01 : f32
    %117 = vector.broadcast %cst_59 : f32 to vector<8x1xf32>
    %118 = arith.divf %116, %117 : vector<8x1xf32>
    %119 = vector.broadcast %118 : vector<8x1xf32> to vector<8x32xf32>
    %120 = arith.subf %114, %119 : vector<8x32xf32>
    %121 = arith.mulf %120, %120 : vector<8x32xf32>
    %cst_60 = arith.constant dense<0.000000e+00> : vector<8xf32>
    %122 = vector.multi_reduction <add>, %121, %cst_60 [1] : vector<8x32xf32> to vector<8xf32>
    %123 = vector.shape_cast %122 : vector<8xf32> to vector<8x1xf32>
    %cst_61 = arith.constant 3.200000e+01 : f32
    %124 = vector.broadcast %cst_61 : f32 to vector<8x1xf32>
    %125 = arith.divf %123, %124 : vector<8x1xf32>
    %126 = vector.broadcast %118 : vector<8x1xf32> to vector<8x32xf32>
    %127 = arith.subf %114, %126 : vector<8x32xf32>
    %cst_62 = arith.constant 9.99999974E-6 : f32
    %128 = vector.broadcast %cst_62 : f32 to vector<8x1xf32>
    %129 = arith.addf %125, %128 : vector<8x1xf32>
    %130 = math.rsqrt %129 : vector<8x1xf32>
    %131 = vector.broadcast %130 : vector<8x1xf32> to vector<8x32xf32>
    %132 = arith.mulf %127, %131 : vector<8x32xf32>
    %133 = vector.broadcast %16 : vector<1x32xf32> to vector<8x32xf32>
    %134 = arith.mulf %132, %133 : vector<8x32xf32>
    %135 = vector.broadcast %17 : vector<1x32xf32> to vector<8x32xf32>
    %136 = arith.addf %134, %135 : vector<8x32xf32>
    %c0_63 = arith.constant 0 : index
    %c0_64 = arith.constant 0 : index
    %137 = vector.load %arg11[%c0_63, %c0_64] : memref<32x64xf32, #tpu.memory_space<vmem>>, vector<32x64xf32>
    %cst_65 = arith.constant dense<0.000000e+00> : vector<8x64xf32>
    %138 = tpu.matmul %136, %137, %cst_65 {dimension_numbers = #tpu.dot_dimension_numbers<[1], [0], [0], [1], [0, 0, 1, 1], [], []>} : vector<8x32xf32>, vector<32x64xf32>, vector<8x64xf32> -> vector<8x64xf32>
    %c0_66 = arith.constant 0 : index
    %c0_67 = arith.constant 0 : index
    %139 = vector.load %arg12[%c0_66, %c0_67] : memref<1x64xf32, #tpu.memory_space<vmem>>, vector<1x64xf32>
    %140 = vector.broadcast %139 : vector<1x64xf32> to vector<8x64xf32>
    %141 = arith.addf %138, %140 : vector<8x64xf32>
    %c0_68 = arith.constant 0 : index
    %c0_69 = arith.constant 0 : index
    %142 = vector.load %arg13[%c0_68, %c0_69] : memref<32x128xf32, #tpu.memory_space<vmem>>, vector<32x128xf32>
    %cst_70 = arith.constant dense<0.000000e+00> : vector<8x128xf32>
    %143 = tpu.matmul %3, %142, %cst_70 {dimension_numbers = #tpu.dot_dimension_numbers<[1], [0], [0], [1], [0, 0, 1, 1], [], []>} : vector<8x32xf32>, vector<32x128xf32>, vector<8x128xf32> -> vector<8x128xf32>
    %c0_71 = arith.constant 0 : index
    %c0_72 = arith.constant 0 : index
    %144 = vector.load %arg14[%c0_71, %c0_72] : memref<1x128xf32, #tpu.memory_space<vmem>>, vector<1x128xf32>
    %145 = vector.broadcast %144 : vector<1x128xf32> to vector<8x128xf32>
    %146 = arith.addf %143, %145 : vector<8x128xf32>
    %147 = vector.extract_strided_slice %146 {offsets = [0, 0], sizes = [8, 64], strides = [1, 1]} : vector<8x128xf32> to vector<8x64xf32>
    %148 = vector.extract_strided_slice %146 {offsets = [0, 64], sizes = [8, 64], strides = [1, 1]} : vector<8x128xf32> to vector<8x64xf32>
    %c0_73 = arith.constant 0 : index
    %c0_74 = arith.constant 0 : index
    %c0_75 = arith.constant 0 : index
    %149 = vector.load %arg4[%c0_73, %c0_74, %c0_75] : memref<1x8x8xf32, #tpu.memory_space<vmem>>, vector<1x8x8xf32>
    %150 = vector.shape_cast %149 : vector<1x8x8xf32> to vector<8x8xf32>
    %c0_76 = arith.constant 0 : index
    %c0_77 = arith.constant 0 : index
    %151 = vector.load %arg15[%c0_76, %c0_77] : memref<64x32xf32, #tpu.memory_space<vmem>>, vector<64x32xf32>
    %c0_78 = arith.constant 0 : index
    %c0_79 = arith.constant 0 : index
    %152 = vector.load %arg16[%c0_78, %c0_79] : memref<1x32xf32, #tpu.memory_space<vmem>>, vector<1x32xf32>
    %c0_80 = arith.constant 0 : index
    %c0_81 = arith.constant 0 : index
    %153 = vector.load %arg17[%c0_80, %c0_81] : memref<1x32xf32, #tpu.memory_space<vmem>>, vector<1x32xf32>
    %c0_82 = arith.constant 0 : index
    %c0_83 = arith.constant 0 : index
    %154 = vector.load %arg18[%c0_82, %c0_83] : memref<1x32xf32, #tpu.memory_space<vmem>>, vector<1x32xf32>
    %155 = vector.extract_strided_slice %141 {offsets = [0, 0], sizes = [8, 16], strides = [1, 1]} : vector<8x64xf32> to vector<8x16xf32>
    %156 = vector.extract_strided_slice %147 {offsets = [0, 0], sizes = [8, 16], strides = [1, 1]} : vector<8x64xf32> to vector<8x16xf32>
    %157 = vector.extract_strided_slice %148 {offsets = [0, 0], sizes = [8, 16], strides = [1, 1]} : vector<8x64xf32> to vector<8x16xf32>
    %158 = tpu.transpose %156, [1, 0] : vector<8x16xf32> -> vector<16x8xf32>
    %cst_84 = arith.constant dense<0.000000e+00> : vector<8x8xf32>
    %159 = tpu.matmul %155, %158, %cst_84 {dimension_numbers = #tpu.dot_dimension_numbers<[1], [0], [0], [1], [0, 0, 1, 1], [], []>} : vector<8x16xf32>, vector<16x8xf32>, vector<8x8xf32> -> vector<8x8xf32>
    %cst_85 = arith.constant 5.000000e-01 : f32
    %160 = vector.broadcast %cst_85 : f32 to vector<8x8xf32>
    %161 = arith.cmpf ogt, %150, %160 : vector<8x8xf32>
    %cst_86 = arith.constant -1.000000e+09 : f32
    %162 = vector.broadcast %cst_86 : f32 to vector<8x8xf32>
    %163 = arith.select %161, %162, %159 : vector<8x8xi1>, vector<8x8xf32>
    %cst_87 = arith.constant dense<0xFF800000> : vector<8xf32>
    %164 = vector.multi_reduction <maximumf>, %163, %cst_87 [1] : vector<8x8xf32> to vector<8xf32>
    %165 = vector.shape_cast %164 : vector<8xf32> to vector<8x1xf32>
    %166 = vector.broadcast %165 : vector<8x1xf32> to vector<8x8xf32>
    %167 = arith.subf %163, %166 : vector<8x8xf32>
    %168 = math.exp %167 : vector<8x8xf32>
    %cst_88 = arith.constant dense<0.000000e+00> : vector<8xf32>
    %169 = vector.multi_reduction <add>, %168, %cst_88 [1] : vector<8x8xf32> to vector<8xf32>
    %170 = vector.shape_cast %169 : vector<8xf32> to vector<8x1xf32>
    %171 = tpu.reciprocal %170 {approx = true} : vector<8x1xf32> -> vector<8x1xf32>
    %172 = vector.broadcast %171 : vector<8x1xf32> to vector<8x8xf32>
    %173 = arith.mulf %168, %172 : vector<8x8xf32>
    %c0_89 = arith.constant 0 : index
    %c0_90 = arith.constant 0 : index
    %c0_91 = arith.constant 0 : index
    %c0_92 = arith.constant 0 : index
    %174 = vector.load %arg27[%c0_89, %c0_90, %c0_91, %c0_92] : memref<1x4x8x8xf32, #tpu.memory_space<vmem>>, vector<1x1x8x8xf32>
    %175 = vector.shape_cast %174 : vector<1x1x8x8xf32> to vector<8x8xf32>
    %176 = vector.shape_cast %173 : vector<8x8xf32> to vector<1x1x8x8xf32>
    tpu.vector_store %arg27[%c0_89, %c0_90, %c0_91, %c0_92], %176 {strides = array<i32>} : memref<1x4x8x8xf32, #tpu.memory_space<vmem>>, vector<1x1x8x8xf32>,
    %cst_93 = arith.constant dense<0.000000e+00> : vector<8x16xf32>
    %177 = tpu.matmul %173, %157, %cst_93 {dimension_numbers = #tpu.dot_dimension_numbers<[1], [0], [0], [1], [0, 0, 1, 1], [], []>} : vector<8x8xf32>, vector<8x16xf32>, vector<8x16xf32> -> vector<8x16xf32>
    %178 = vector.extract_strided_slice %141 {offsets = [0, 16], sizes = [8, 16], strides = [1, 1]} : vector<8x64xf32> to vector<8x16xf32>
    %179 = vector.extract_strided_slice %147 {offsets = [0, 16], sizes = [8, 16], strides = [1, 1]} : vector<8x64xf32> to vector<8x16xf32>
    %180 = vector.extract_strided_slice %148 {offsets = [0, 16], sizes = [8, 16], strides = [1, 1]} : vector<8x64xf32> to vector<8x16xf32>
    %181 = tpu.transpose %179, [1, 0] : vector<8x16xf32> -> vector<16x8xf32>
    %cst_94 = arith.constant dense<0.000000e+00> : vector<8x8xf32>
    %182 = tpu.matmul %178, %181, %cst_94 {dimension_numbers = #tpu.dot_dimension_numbers<[1], [0], [0], [1], [0, 0, 1, 1], [], []>} : vector<8x16xf32>, vector<16x8xf32>, vector<8x8xf32> -> vector<8x8xf32>
    %cst_95 = arith.constant 5.000000e-01 : f32
    %183 = vector.broadcast %cst_95 : f32 to vector<8x8xf32>
    %184 = arith.cmpf ogt, %150, %183 : vector<8x8xf32>
    %cst_96 = arith.constant -1.000000e+09 : f32
    %185 = vector.broadcast %cst_96 : f32 to vector<8x8xf32>
    %186 = arith.select %184, %185, %182 : vector<8x8xi1>, vector<8x8xf32>
    %cst_97 = arith.constant dense<0xFF800000> : vector<8xf32>
    %187 = vector.multi_reduction <maximumf>, %186, %cst_97 [1] : vector<8x8xf32> to vector<8xf32>
    %188 = vector.shape_cast %187 : vector<8xf32> to vector<8x1xf32>
    %189 = vector.broadcast %188 : vector<8x1xf32> to vector<8x8xf32>
    %190 = arith.subf %186, %189 : vector<8x8xf32>
    %191 = math.exp %190 : vector<8x8xf32>
    %cst_98 = arith.constant dense<0.000000e+00> : vector<8xf32>
    %192 = vector.multi_reduction <add>, %191, %cst_98 [1] : vector<8x8xf32> to vector<8xf32>
    %193 = vector.shape_cast %192 : vector<8xf32> to vector<8x1xf32>
    %194 = tpu.reciprocal %193 {approx = true} : vector<8x1xf32> -> vector<8x1xf32>
    %195 = vector.broadcast %194 : vector<8x1xf32> to vector<8x8xf32>
    %196 = arith.mulf %191, %195 : vector<8x8xf32>
    %c0_99 = arith.constant 0 : index
    %c1_100 = arith.constant 1 : index
    %c0_101 = arith.constant 0 : index
    %c0_102 = arith.constant 0 : index
    %197 = vector.load %arg27[%c0_99, %c1_100, %c0_101, %c0_102] : memref<1x4x8x8xf32, #tpu.memory_space<vmem>>, vector<1x1x8x8xf32>
    %198 = vector.shape_cast %197 : vector<1x1x8x8xf32> to vector<8x8xf32>
    %199 = vector.shape_cast %196 : vector<8x8xf32> to vector<1x1x8x8xf32>
    tpu.vector_store %arg27[%c0_99, %c1_100, %c0_101, %c0_102], %199 {strides = array<i32>} : memref<1x4x8x8xf32, #tpu.memory_space<vmem>>, vector<1x1x8x8xf32>,
    %cst_103 = arith.constant dense<0.000000e+00> : vector<8x16xf32>
    %200 = tpu.matmul %196, %180, %cst_103 {dimension_numbers = #tpu.dot_dimension_numbers<[1], [0], [0], [1], [0, 0, 1, 1], [], []>} : vector<8x8xf32>, vector<8x16xf32>, vector<8x16xf32> -> vector<8x16xf32>
    %201 = vector.extract_strided_slice %141 {offsets = [0, 32], sizes = [8, 16], strides = [1, 1]} : vector<8x64xf32> to vector<8x16xf32>
    %202 = vector.extract_strided_slice %147 {offsets = [0, 32], sizes = [8, 16], strides = [1, 1]} : vector<8x64xf32> to vector<8x16xf32>
    %203 = vector.extract_strided_slice %148 {offsets = [0, 32], sizes = [8, 16], strides = [1, 1]} : vector<8x64xf32> to vector<8x16xf32>
    %204 = tpu.transpose %202, [1, 0] : vector<8x16xf32> -> vector<16x8xf32>
    %cst_104 = arith.constant dense<0.000000e+00> : vector<8x8xf32>
    %205 = tpu.matmul %201, %204, %cst_104 {dimension_numbers = #tpu.dot_dimension_numbers<[1], [0], [0], [1], [0, 0, 1, 1], [], []>} : vector<8x16xf32>, vector<16x8xf32>, vector<8x8xf32> -> vector<8x8xf32>
    %cst_105 = arith.constant 5.000000e-01 : f32
    %206 = vector.broadcast %cst_105 : f32 to vector<8x8xf32>
    %207 = arith.cmpf ogt, %150, %206 : vector<8x8xf32>
    %cst_106 = arith.constant -1.000000e+09 : f32
    %208 = vector.broadcast %cst_106 : f32 to vector<8x8xf32>
    %209 = arith.select %207, %208, %205 : vector<8x8xi1>, vector<8x8xf32>
    %cst_107 = arith.constant dense<0xFF800000> : vector<8xf32>
    %210 = vector.multi_reduction <maximumf>, %209, %cst_107 [1] : vector<8x8xf32> to vector<8xf32>
    %211 = vector.shape_cast %210 : vector<8xf32> to vector<8x1xf32>
    %212 = vector.broadcast %211 : vector<8x1xf32> to vector<8x8xf32>
    %213 = arith.subf %209, %212 : vector<8x8xf32>
    %214 = math.exp %213 : vector<8x8xf32>
    %cst_108 = arith.constant dense<0.000000e+00> : vector<8xf32>
    %215 = vector.multi_reduction <add>, %214, %cst_108 [1] : vector<8x8xf32> to vector<8xf32>
    %216 = vector.shape_cast %215 : vector<8xf32> to vector<8x1xf32>
    %217 = tpu.reciprocal %216 {approx = true} : vector<8x1xf32> -> vector<8x1xf32>
    %218 = vector.broadcast %217 : vector<8x1xf32> to vector<8x8xf32>
    %219 = arith.mulf %214, %218 : vector<8x8xf32>
    %c0_109 = arith.constant 0 : index
    %c2_110 = arith.constant 2 : index
    %c0_111 = arith.constant 0 : index
    %c0_112 = arith.constant 0 : index
    %220 = vector.load %arg27[%c0_109, %c2_110, %c0_111, %c0_112] : memref<1x4x8x8xf32, #tpu.memory_space<vmem>>, vector<1x1x8x8xf32>
    %221 = vector.shape_cast %220 : vector<1x1x8x8xf32> to vector<8x8xf32>
    %222 = vector.shape_cast %219 : vector<8x8xf32> to vector<1x1x8x8xf32>
    tpu.vector_store %arg27[%c0_109, %c2_110, %c0_111, %c0_112], %222 {strides = array<i32>} : memref<1x4x8x8xf32, #tpu.memory_space<vmem>>, vector<1x1x8x8xf32>,
    %cst_113 = arith.constant dense<0.000000e+00> : vector<8x16xf32>
    %223 = tpu.matmul %219, %203, %cst_113 {dimension_numbers = #tpu.dot_dimension_numbers<[1], [0], [0], [1], [0, 0, 1, 1], [], []>} : vector<8x8xf32>, vector<8x16xf32>, vector<8x16xf32> -> vector<8x16xf32>
    %224 = vector.extract_strided_slice %141 {offsets = [0, 48], sizes = [8, 16], strides = [1, 1]} : vector<8x64xf32> to vector<8x16xf32>
    %225 = vector.extract_strided_slice %147 {offsets = [0, 48], sizes = [8, 16], strides = [1, 1]} : vector<8x64xf32> to vector<8x16xf32>
    %226 = vector.extract_strided_slice %148 {offsets = [0, 48], sizes = [8, 16], strides = [1, 1]} : vector<8x64xf32> to vector<8x16xf32>
    %227 = tpu.transpose %225, [1, 0] : vector<8x16xf32> -> vector<16x8xf32>
    %cst_114 = arith.constant dense<0.000000e+00> : vector<8x8xf32>
    %228 = tpu.matmul %224, %227, %cst_114 {dimension_numbers = #tpu.dot_dimension_numbers<[1], [0], [0], [1], [0, 0, 1, 1], [], []>} : vector<8x16xf32>, vector<16x8xf32>, vector<8x8xf32> -> vector<8x8xf32>
    %cst_115 = arith.constant 5.000000e-01 : f32
    %229 = vector.broadcast %cst_115 : f32 to vector<8x8xf32>
    %230 = arith.cmpf ogt, %150, %229 : vector<8x8xf32>
    %cst_116 = arith.constant -1.000000e+09 : f32
    %231 = vector.broadcast %cst_116 : f32 to vector<8x8xf32>
    %232 = arith.select %230, %231, %228 : vector<8x8xi1>, vector<8x8xf32>
    %cst_117 = arith.constant dense<0xFF800000> : vector<8xf32>
    %233 = vector.multi_reduction <maximumf>, %232, %cst_117 [1] : vector<8x8xf32> to vector<8xf32>
    %234 = vector.shape_cast %233 : vector<8xf32> to vector<8x1xf32>
    %235 = vector.broadcast %234 : vector<8x1xf32> to vector<8x8xf32>
    %236 = arith.subf %232, %235 : vector<8x8xf32>
    %237 = math.exp %236 : vector<8x8xf32>
    %cst_118 = arith.constant dense<0.000000e+00> : vector<8xf32>
    %238 = vector.multi_reduction <add>, %237, %cst_118 [1] : vector<8x8xf32> to vector<8xf32>
    %239 = vector.shape_cast %238 : vector<8xf32> to vector<8x1xf32>
    %240 = tpu.reciprocal %239 {approx = true} : vector<8x1xf32> -> vector<8x1xf32>
    %241 = vector.broadcast %240 : vector<8x1xf32> to vector<8x8xf32>
    %242 = arith.mulf %237, %241 : vector<8x8xf32>
    %c0_119 = arith.constant 0 : index
    %c3_120 = arith.constant 3 : index
    %c0_121 = arith.constant 0 : index
    %c0_122 = arith.constant 0 : index
    %243 = vector.load %arg27[%c0_119, %c3_120, %c0_121, %c0_122] : memref<1x4x8x8xf32, #tpu.memory_space<vmem>>, vector<1x1x8x8xf32>
    %244 = vector.shape_cast %243 : vector<1x1x8x8xf32> to vector<8x8xf32>
    %245 = vector.shape_cast %242 : vector<8x8xf32> to vector<1x1x8x8xf32>
    tpu.vector_store %arg27[%c0_119, %c3_120, %c0_121, %c0_122], %245 {strides = array<i32>} : memref<1x4x8x8xf32, #tpu.memory_space<vmem>>, vector<1x1x8x8xf32>,
    %cst_123 = arith.constant dense<0.000000e+00> : vector<8x16xf32>
    %246 = tpu.matmul %242, %226, %cst_123 {dimension_numbers = #tpu.dot_dimension_numbers<[1], [0], [0], [1], [0, 0, 1, 1], [], []>} : vector<8x8xf32>, vector<8x16xf32>, vector<8x16xf32> -> vector<8x16xf32>
    %247 = tpu.concatenate %177, %200, %223, %246 in 1 : vector<8x16xf32>, vector<8x16xf32>, vector<8x16xf32>, vector<8x16xf32> -> vector<8x64xf32>
    %cst_124 = arith.constant dense<0.000000e+00> : vector<8x32xf32>
    %248 = tpu.matmul %247, %151, %cst_124 {dimension_numbers = #tpu.dot_dimension_numbers<[1], [0], [0], [1], [0, 0, 1, 1], [], []>} : vector<8x64xf32>, vector<64x32xf32>, vector<8x32xf32> -> vector<8x32xf32>
    %249 = vector.broadcast %152 : vector<1x32xf32> to vector<8x32xf32>
    %250 = arith.addf %248, %249 : vector<8x32xf32>
    %251 = arith.addf %250, %136 : vector<8x32xf32>
    %cst_125 = arith.constant dense<0.000000e+00> : vector<8xf32>
    %252 = vector.multi_reduction <add>, %251, %cst_125 [1] : vector<8x32xf32> to vector<8xf32>
    %253 = vector.shape_cast %252 : vector<8xf32> to vector<8x1xf32>
    %cst_126 = arith.constant 3.200000e+01 : f32
    %254 = vector.broadcast %cst_126 : f32 to vector<8x1xf32>
    %255 = arith.divf %253, %254 : vector<8x1xf32>
    %256 = vector.broadcast %255 : vector<8x1xf32> to vector<8x32xf32>
    %257 = arith.subf %251, %256 : vector<8x32xf32>
    %258 = arith.mulf %257, %257 : vector<8x32xf32>
    %cst_127 = arith.constant dense<0.000000e+00> : vector<8xf32>
    %259 = vector.multi_reduction <add>, %258, %cst_127 [1] : vector<8x32xf32> to vector<8xf32>
    %260 = vector.shape_cast %259 : vector<8xf32> to vector<8x1xf32>
    %cst_128 = arith.constant 3.200000e+01 : f32
    %261 = vector.broadcast %cst_128 : f32 to vector<8x1xf32>
    %262 = arith.divf %260, %261 : vector<8x1xf32>
    %263 = vector.broadcast %255 : vector<8x1xf32> to vector<8x32xf32>
    %264 = arith.subf %251, %263 : vector<8x32xf32>
    %cst_129 = arith.constant 9.99999974E-6 : f32
    %265 = vector.broadcast %cst_129 : f32 to vector<8x1xf32>
    %266 = arith.addf %262, %265 : vector<8x1xf32>
    %267 = math.rsqrt %266 : vector<8x1xf32>
    %268 = vector.broadcast %267 : vector<8x1xf32> to vector<8x32xf32>
    %269 = arith.mulf %264, %268 : vector<8x32xf32>
    %270 = vector.broadcast %153 : vector<1x32xf32> to vector<8x32xf32>
    %271 = arith.mulf %269, %270 : vector<8x32xf32>
    %272 = vector.broadcast %154 : vector<1x32xf32> to vector<8x32xf32>
    %273 = arith.addf %271, %272 : vector<8x32xf32>
    %c0_130 = arith.constant 0 : index
    %c0_131 = arith.constant 0 : index
    %274 = vector.load %arg19[%c0_130, %c0_131] : memref<32x64xf32, #tpu.memory_space<vmem>>, vector<32x64xf32>
    %cst_132 = arith.constant dense<0.000000e+00> : vector<8x64xf32>
    %275 = tpu.matmul %273, %274, %cst_132 {dimension_numbers = #tpu.dot_dimension_numbers<[1], [0], [0], [1], [0, 0, 1, 1], [], []>} : vector<8x32xf32>, vector<32x64xf32>, vector<8x64xf32> -> vector<8x64xf32>
    %c0_133 = arith.constant 0 : index
    %c0_134 = arith.constant 0 : index
    %276 = vector.load %arg20[%c0_133, %c0_134] : memref<1x64xf32, #tpu.memory_space<vmem>>, vector<1x64xf32>
    %277 = vector.broadcast %276 : vector<1x64xf32> to vector<8x64xf32>
    %278 = arith.addf %275, %277 : vector<8x64xf32>
    %cst_135 = arith.constant 0.000000e+00 : f32
    %279 = vector.broadcast %cst_135 : f32 to vector<8x64xf32>
    %280 = arith.maximumf %278, %279 : vector<8x64xf32>
    %c0_136 = arith.constant 0 : index
    %c0_137 = arith.constant 0 : index
    %281 = vector.load %arg21[%c0_136, %c0_137] : memref<64x32xf32, #tpu.memory_space<vmem>>, vector<64x32xf32>
    %cst_138 = arith.constant dense<0.000000e+00> : vector<8x32xf32>
    %282 = tpu.matmul %280, %281, %cst_138 {dimension_numbers = #tpu.dot_dimension_numbers<[1], [0], [0], [1], [0, 0, 1, 1], [], []>} : vector<8x64xf32>, vector<64x32xf32>, vector<8x32xf32> -> vector<8x32xf32>
    %c0_139 = arith.constant 0 : index
    %c0_140 = arith.constant 0 : index
    %283 = vector.load %arg22[%c0_139, %c0_140] : memref<1x32xf32, #tpu.memory_space<vmem>>, vector<1x32xf32>
    %284 = vector.broadcast %283 : vector<1x32xf32> to vector<8x32xf32>
    %285 = arith.addf %282, %284 : vector<8x32xf32>
    %286 = arith.addf %285, %273 : vector<8x32xf32>
    %c0_141 = arith.constant 0 : index
    %c0_142 = arith.constant 0 : index
    %287 = vector.load %arg23[%c0_141, %c0_142] : memref<1x32xf32, #tpu.memory_space<vmem>>, vector<1x32xf32>
    %c0_143 = arith.constant 0 : index
    %c0_144 = arith.constant 0 : index
    %288 = vector.load %arg24[%c0_143, %c0_144] : memref<1x32xf32, #tpu.memory_space<vmem>>, vector<1x32xf32>
    %cst_145 = arith.constant dense<0.000000e+00> : vector<8xf32>
    %289 = vector.multi_reduction <add>, %286, %cst_145 [1] : vector<8x32xf32> to vector<8xf32>
    %290 = vector.shape_cast %289 : vector<8xf32> to vector<8x1xf32>
    %cst_146 = arith.constant 3.200000e+01 : f32
    %291 = vector.broadcast %cst_146 : f32 to vector<8x1xf32>
    %292 = arith.divf %290, %291 : vector<8x1xf32>
    %293 = vector.broadcast %292 : vector<8x1xf32> to vector<8x32xf32>
    %294 = arith.subf %286, %293 : vector<8x32xf32>
    %295 = arith.mulf %294, %294 : vector<8x32xf32>
    %cst_147 = arith.constant dense<0.000000e+00> : vector<8xf32>
    %296 = vector.multi_reduction <add>, %295, %cst_147 [1] : vector<8x32xf32> to vector<8xf32>
    %297 = vector.shape_cast %296 : vector<8xf32> to vector<8x1xf32>
    %cst_148 = arith.constant 3.200000e+01 : f32
    %298 = vector.broadcast %cst_148 : f32 to vector<8x1xf32>
    %299 = arith.divf %297, %298 : vector<8x1xf32>
    %300 = vector.broadcast %292 : vector<8x1xf32> to vector<8x32xf32>
    %301 = arith.subf %286, %300 : vector<8x32xf32>
    %cst_149 = arith.constant 9.99999974E-6 : f32
    %302 = vector.broadcast %cst_149 : f32 to vector<8x1xf32>
    %303 = arith.addf %299, %302 : vector<8x1xf32>
    %304 = math.rsqrt %303 : vector<8x1xf32>
    %305 = vector.broadcast %304 : vector<8x1xf32> to vector<8x32xf32>
    %306 = arith.mulf %301, %305 : vector<8x32xf32>
    %307 = vector.broadcast %287 : vector<1x32xf32> to vector<8x32xf32>
    %308 = arith.mulf %306, %307 : vector<8x32xf32>
    %309 = vector.broadcast %288 : vector<1x32xf32> to vector<8x32xf32>
    %310 = arith.addf %308, %309 : vector<8x32xf32>
    %c0_150 = arith.constant 0 : index
    %c0_151 = arith.constant 0 : index
    %c0_152 = arith.constant 0 : index
    %311 = vector.load %arg25[%c0_150, %c0_151, %c0_152] : memref<1x8x32xf32, #tpu.memory_space<vmem>>, vector<1x8x32xf32>
    %312 = vector.shape_cast %311 : vector<1x8x32xf32> to vector<8x32xf32>
    %313 = vector.shape_cast %310 : vector<8x32xf32> to vector<1x8x32xf32>
    tpu.vector_store %arg25[%c0_150, %c0_151, %c0_152], %313 {strides = array<i32>} : memref<1x8x32xf32, #tpu.memory_space<vmem>>, vector<1x8x32xf32>,
    return
  }
  func.func @transform_0(%arg0: i32) -> (i32, i32, i32) {
    %c0_i32 = arith.constant 0 : i32
    %c0_i32_0 = arith.constant 0 : i32
    %c0_i32_1 = arith.constant 0 : i32
    return %arg0, %c0_i32, %c0_i32_0 : i32, i32, i32
  }
  func.func @transform_1(%arg0: i32) -> (i32, i32, i32) {
    %c0_i32 = arith.constant 0 : i32
    %c0_i32_0 = arith.constant 0 : i32
    %c0_i32_1 = arith.constant 0 : i32
    return %arg0, %c0_i32, %c0_i32_0 : i32, i32, i32
  }
  func.func @transform_2(%arg0: i32) -> (i32, i32, i32) {
    %c0_i32 = arith.constant 0 : i32
    %c0_i32_0 = arith.constant 0 : i32
    %c0_i32_1 = arith.constant 0 : i32
    return %arg0, %c0_i32, %c0_i32_0 : i32, i32, i32
  }
  func.func @transform_3(%arg0: i32) -> (i32, i32, i32) {
    %c0_i32 = arith.constant 0 : i32
    %c0_i32_0 = arith.constant 0 : i32
    %c0_i32_1 = arith.constant 0 : i32
    return %arg0, %c0_i32, %c0_i32_0 : i32, i32, i32
  }
  func.func @transform_4(%arg0: i32) -> (i32, i32) {
    %c0_i32 = arith.constant 0 : i32
    %c0_i32_0 = arith.constant 0 : i32
    %c0_i32_1 = arith.constant 0 : i32
    return %c0_i32, %c0_i32_0 : i32, i32
  }
  func.func @transform_5(%arg0: i32) -> (i32, i32) {
    %c0_i32 = arith.constant 0 : i32
    %c0_i32_0 = arith.constant 0 : i32
    %c0_i32_1 = arith.constant 0 : i32
    return %c0_i32, %c0_i32_0 : i32, i32
  }
  func.func @transform_6(%arg0: i32) -> (i32, i32) {
    %c0_i32 = arith.constant 0 : i32
    %c0_i32_0 = arith.constant 0 : i32
    %c0_i32_1 = arith.constant 0 : i32
    return %c0_i32, %c0_i32_0 : i32, i32
  }
  func.func @transform_7(%arg0: i32) -> (i32, i32) {
    %c0_i32 = arith.constant 0 : i32
    %c0_i32_0 = arith.constant 0 : i32
    %c0_i32_1 = arith.constant 0 : i32
    return %c0_i32, %c0_i32_0 : i32, i32
  }
  func.func @transform_8(%arg0: i32) -> (i32, i32) {
    %c0_i32 = arith.constant 0 : i32
    %c0_i32_0 = arith.constant 0 : i32
    %c0_i32_1 = arith.constant 0 : i32
    return %c0_i32, %c0_i32_0 : i32, i32
  }
  func.func @transform_9(%arg0: i32) -> (i32, i32) {
    %c0_i32 = arith.constant 0 : i32
    %c0_i32_0 = arith.constant 0 : i32
    %c0_i32_1 = arith.constant 0 : i32
    return %c0_i32, %c0_i32_0 : i32, i32
  }
  func.func @transform_10(%arg0: i32) -> (i32, i32) {
    %c0_i32 = arith.constant 0 : i32
    %c0_i32_0 = arith.constant 0 : i32
    %c0_i32_1 = arith.constant 0 : i32
    return %c0_i32, %c0_i32_0 : i32, i32
  }
  func.func @transform_11(%arg0: i32) -> (i32, i32) {
    %c0_i32 = arith.constant 0 : i32
    %c0_i32_0 = arith.constant 0 : i32
    %c0_i32_1 = arith.constant 0 : i32
    return %c0_i32, %c0_i32_0 : i32, i32
  }
  func.func @transform_12(%arg0: i32) -> (i32, i32) {
    %c0_i32 = arith.constant 0 : i32
    %c0_i32_0 = arith.constant 0 : i32
    %c0_i32_1 = arith.constant 0 : i32
    return %c0_i32, %c0_i32_0 : i32, i32
  }
  func.func @transform_13(%arg0: i32) -> (i32, i32) {
    %c0_i32 = arith.constant 0 : i32
    %c0_i32_0 = arith.constant 0 : i32
    %c0_i32_1 = arith.constant 0 : i32
    return %c0_i32, %c0_i32_0 : i32, i32
  }
  func.func @transform_14(%arg0: i32) -> (i32, i32) {
    %c0_i32 = arith.constant 0 : i32
    %c0_i32_0 = arith.constant 0 : i32
    %c0_i32_1 = arith.constant 0 : i32
    return %c0_i32, %c0_i32_0 : i32, i32
  }
  func.func @transform_15(%arg0: i32) -> (i32, i32) {
    %c0_i32 = arith.constant 0 : i32
    %c0_i32_0 = arith.constant 0 : i32
    %c0_i32_1 = arith.constant 0 : i32
    return %c0_i32, %c0_i32_0 : i32, i32
  }
  func.func @transform_16(%arg0: i32) -> (i32, i32) {
    %c0_i32 = arith.constant 0 : i32
    %c0_i32_0 = arith.constant 0 : i32
    %c0_i32_1 = arith.constant 0 : i32
    return %c0_i32, %c0_i32_0 : i32, i32
  }
  func.func @transform_17(%arg0: i32) -> (i32, i32) {
    %c0_i32 = arith.constant 0 : i32
    %c0_i32_0 = arith.constant 0 : i32
    %c0_i32_1 = arith.constant 0 : i32
    return %c0_i32, %c0_i32_0 : i32, i32
  }
  func.func @transform_18(%arg0: i32) -> (i32, i32) {
    %c0_i32 = arith.constant 0 : i32
    %c0_i32_0 = arith.constant 0 : i32
    %c0_i32_1 = arith.constant 0 : i32
    return %c0_i32, %c0_i32_0 : i32, i32
  }
  func.func @transform_19(%arg0: i32) -> (i32, i32) {
    %c0_i32 = arith.constant 0 : i32
    %c0_i32_0 = arith.constant 0 : i32
    %c0_i32_1 = arith.constant 0 : i32
    return %c0_i32, %c0_i32_0 : i32, i32
  }
  func.func @transform_20(%arg0: i32) -> (i32, i32) {
    %c0_i32 = arith.constant 0 : i32
    %c0_i32_0 = arith.constant 0 : i32
    %c0_i32_1 = arith.constant 0 : i32
    return %c0_i32, %c0_i32_0 : i32, i32
  }
  func.func @transform_21(%arg0: i32) -> (i32, i32) {
    %c0_i32 = arith.constant 0 : i32
    %c0_i32_0 = arith.constant 0 : i32
    %c0_i32_1 = arith.constant 0 : i32
    return %c0_i32, %c0_i32_0 : i32, i32
  }
  func.func @transform_22(%arg0: i32) -> (i32, i32) {
    %c0_i32 = arith.constant 0 : i32
    %c0_i32_0 = arith.constant 0 : i32
    %c0_i32_1 = arith.constant 0 : i32
    return %c0_i32, %c0_i32_0 : i32, i32
  }
  func.func @transform_23(%arg0: i32) -> (i32, i32) {
    %c0_i32 = arith.constant 0 : i32
    %c0_i32_0 = arith.constant 0 : i32
    %c0_i32_1 = arith.constant 0 : i32
    return %c0_i32, %c0_i32_0 : i32, i32
  }
  func.func @transform_24(%arg0: i32) -> (i32, i32, i32) {
    %c0_i32 = arith.constant 0 : i32
    %c0_i32_0 = arith.constant 0 : i32
    %c0_i32_1 = arith.constant 0 : i32
    return %arg0, %c0_i32, %c0_i32_0 : i32, i32, i32
  }
  func.func @transform_25(%arg0: i32) -> (i32, i32, i32, i32) {
    %c0_i32 = arith.constant 0 : i32
    %c0_i32_0 = arith.constant 0 : i32
    %c0_i32_1 = arith.constant 0 : i32
    %c0_i32_2 = arith.constant 0 : i32
    return %arg0, %c0_i32, %c0_i32_0, %c0_i32_1 : i32, i32, i32, i32
  }
  func.func @transform_26(%arg0: i32) -> (i32, i32, i32, i32) {
    %c0_i32 = arith.constant 0 : i32
    %c0_i32_0 = arith.constant 0 : i32
    %c0_i32_1 = arith.constant 0 : i32
    %c0_i32_2 = arith.constant 0 : i32
    return %arg0, %c0_i32, %c0_i32_0, %c0_i32_1 : i32, i32, i32, i32
  }
}

</mosaic_0001>

<bundles_post_ra>
// kernel: tpu_custom_call.1
= control target key start
LH: loop header
LB: loop body
LE: loop exit
PB: predicated region body
PF: predicated region fallthrough
CT: control target
= control target key end

     0   :  { %s4495_s0 = inlined_call_operand.vmem [shape: f32[2,8,32], index: 0, kind: input, shape index: {}]   ;;  %s4496_s1 = inlined_call_operand.vmem [shape: f32[2,8,32], index: 1, kind: input, shape index: {}]   ;;  %s4497_s2 = inlined_call_operand.vmem [shape: f32[2,8,8], index: 2, kind: input, shape index: {}]   ;;  %s4498_s3 = inlined_call_operand.vmem [shape: f32[2,8,8], index: 3, kind: input, shape index: {}]   ;;  %s4499_s4 = inlined_call_operand.vmem [shape: f32[32,192], index: 4, kind: input, shape index: {}]   ;;  %s4500_s5 = inlined_call_operand.vmem [shape: f32[1,192], index: 5, kind: input, shape index: {}]   ;;  %s4501_s6 = inlined_call_operand.vmem [shape: f32[64,32], index: 6, kind: input, shape index: {}]   ;;  %s4502_s7 = inlined_call_operand.vmem [shape: f32[1,32], index: 7, kind: input, shape index: {}]   ;;  %s4503_s8 = inlined_call_operand.vmem [shape: f32[1,32], index: 8, kind: input, shape index: {}]   ;;  %s4504_s9 = inlined_call_operand.vmem [shape: f32[1,32], index: 9, kind: input, shape index: {}]   ;;  %s4505_s10 = inlined_call_operand.vmem [shape: f32[32,64], index: 10, kind: input, shape index: {}]   ;;  %s4506_s11 = inlined_call_operand.vmem [shape: f32[1,64], index: 11, kind: input, shape index: {}]   ;;  %s4507_s12 = inlined_call_operand.vmem [shape: f32[32,128], index: 12, kind: input, shape index: {}]   ;;  %s4508_s13 = inlined_call_operand.vmem [shape: f32[1,128], index: 13, kind: input, shape index: {}]   ;;  %s4509_s14 = inlined_call_operand.vmem [shape: f32[64,32], index: 14, kind: input, shape index: {}]   ;;  %s4510_s15 = inlined_call_operand.vmem [shape: f32[1,32], index: 15, kind: input, shape index: {}]   ;;  %s4511_s16 = inlined_call_operand.vmem [shape: f32[1,32], index: 16, kind: input, shape index: {}]   ;;  %s4512_s17 = inlined_call_operand.vmem [shape: f32[1,32], index: 17, kind: input, shape index: {}]   ;;  %s4513_s18 = inlined_call_operand.vmem [shape: f32[32,64], index: 18, kind: input, shape index: {}]   ;;  %s4514_s19 = inlined_call_operand.vmem [shape: f32[1,64], index: 19, kind: input, shape index: {}]   ;;  %s4515_s20 = inlined_call_operand.vmem [shape: f32[64,32], index: 20, kind: input, shape index: {}]   ;;  %s4516_s21 = inlined_call_operand.vmem [shape: f32[1,32], index: 21, kind: input, shape index: {}]   ;;  %s4517_s22 = inlined_call_operand.vmem [shape: f32[1,32], index: 22, kind: input, shape index: {}]   ;;  %s4518_s23 = inlined_call_operand.vmem [shape: f32[1,32], index: 23, kind: input, shape index: {}]   ;;  %s4519_s24 = inlined_call_operand.hbm [shape: f32[2,8,32], index: 24, kind: output, shape index: {0}]   ;;  %s4520_s25 = inlined_call_operand.hbm [shape: f32[2,4,8,8], index: 25, kind: output, shape index: {1}]   ;;  %s4521_s26 = inlined_call_operand.hbm [shape: f32[2,4,8,8], index: 26, kind: output, shape index: {2}]  }
   0x1   :  { %4553 = sst [smem:[#allocation16_spill]] %s4495_s0 }
   0x2   :  { %4554 = sst [smem:[#allocation17_spill]] %s4496_s1 }
   0x3   :  { %4555 = sst [smem:[#allocation18_spill]] %s4497_s2 }
   0x4   :  { %4556 = sst [smem:[#allocation19_spill]] %s4498_s3 }
   0x5   :  { %4557 = sst [smem:[#allocation20_spill]] %s4499_s4 }
   0x6   :  { %4558 = sst [smem:[#allocation21_spill]] %s4500_s5 }
   0x7   :  { %4559 = sst [smem:[#allocation22_spill]] %s4501_s6 }
   0x8   :  { %4560 = sst [smem:[#allocation23_spill]] %s4502_s7 }
   0x9   :  { %4561 = sst [smem:[#allocation24_spill]] %s4503_s8 }
   0xa   :  { %4562 = sst [smem:[#allocation25_spill]] %s4504_s9 }
   0xb   :  { %4563 = sst [smem:[#allocation26_spill]] %s4505_s10 }
   0xc   :  { %4564 = sst [smem:[#allocation27_spill]] %s4517_s22 }
   0xd   :  { %4565 = sst [smem:[#allocation28_spill]] %s4518_s23 }
   0xe   :  { %4566 = sst [smem:[#allocation29_spill]] %s4519_s24 }
   0xf   :  { %4567 = sst [smem:[#allocation30_spill]] %s4521_s26 }
  0x10   :  { %32 = vsyncpa [#allocation3], 0 }
  0x11   :  { %34 = vsyncpa [#allocation3 + $0x1], 0 }
  0x12   :  { %35 = vsyncpa [#allocation5], 0 }
  0x13   :  { %37 = vsyncpa [#allocation5 + $0x1], 0  ;;  %s3900_s27 = smov 0   ;;  %s3902_s3 = smov 0  }
  0x14   :  { %s3904_s7 = smov 0   ;;  %s3906_s28 = smov 0  }
  0x15 LB: > { %4568 = sst [smem:[#allocation9_spill]] %s3736_s27  ;;  %s3921_s8 = sadd.s32 4294967295, %s3748_s28   ;;  %s3748_s28 = sphi %s3906_s28, %s4604_s28   ;;  %s3744_s7 = sphi %s3904_s7, %s4607_s7   ;;  %s3740_s3 = sphi %s3902_s3, %s4606_s3   ;;  %s3736_s27 = sphi %s3900_s27, %s4605_s27  }
  0x16   : > { %4569 = sst [smem:[#allocation10_spill]] %s3740_s3  ;;  %s4525_s4 = sadd.s32 4294967294, %s3748_s28  }
  0x17   : > { %4570 = sst [smem:[#allocation11_spill]] %s3744_s7  ;;  %s3925_s29 = sadd.s32 1, %s3748_s28  }
  0x18   : > { %4571 = sst [smem:[#allocation12_spill]] %s3748_s28  ;;  %s574_s0 = sadd.s32 1, %s3744_s7 }
  0x19   : > { %4572 = sst [smem:[#allocation13_spill]] %s3925_s29  ;;  %s571_s9 = ssub.s32 %s3748_s28, %s3925_s29 }
  0x1a   : > { %p584_p0 = scmp.ne.s32.totalorder %s3744_s7, %s3740_s3  ;;  %p572_p1 = scmp.eq.s32.totalorder %s571_s9, 0 }
  0x1b   : > { %p585_p2 = scmp.eq.s32.totalorder %s3921_s8, 1  ;;  %p590_p3 = scmp.ne.s32.totalorder %s3740_s3, %s3736_s27 }
  0x1c   : > { %p591_p4 = scmp.eq.s32.totalorder %s4525_s4, 1  ;;  %p3152_p7 = scmp.ge.s32.totalorder %s3748_s28, 1 }
  0x1d   : > { %s3938_s30 = scalar_select %p572_p1, %s3744_s7, %s574_s0  }
  0x1e   : > { %p3940_p5 = por %p585_p2, %p584_p0  ;;  %p3944_p6 = por %p591_p4, %p590_p3 }
  0x1f   : > { %4573 = sst [smem:[#allocation14_spill]] %s3938_s30  ;;  %p749_p8 = scmp.lt.s32.totalorder %s3748_s28, 3 }
  0x20   : > { %s4575_s5 = scalar_select %p3944_p6, 1, 0 }
  0x21   : > { %p750_p9 = pnand %p3152_p7, %p749_p8 }
  0x22   : > { %4576 = sst [smem:[#allocation15_spill]] %s4575_s5  ;;  %s4577_s1 = sld [smem:[#allocation20_spill]] (!%p750_p9)  ;;  %v3750_v7 = vmov (!%p750_p9), 0.0   ;;  %vm878_vm0 = vcmask (!%p750_p9), 261120   ;;  %v868_v14 = vlaneseq (!%p750_p9)  ;;  %vm3751_vm1 = vmmov (!%p750_p9), 0  }
  0x23   : > { %753 = sbr.rel (%p750_p9) target bundleno = 4315 (0x10db), region = 116  ;;  %p840_p10 = scmp.lt.s32.totalorder (!%p750_p9), %s3921_s8, 1  ;;  %946 = vmatprep.mubr.f32.mxu0 (!%p750_p9), %v3750_v7  ;;  %3300 = vmatprep.subr.mxu1 (!%p750_p9), %v3750_v7  ;;  %vm968_vm2 = vcmask (!%p750_p9), 130048   ;;  %vm1045_vm4 = vcmask (!%p750_p9), 64512   ;;  %vm1650_vm5 = vcmask (!%p750_p9), 392192   ;;  %vm1658_vm6 = vcmask (!%p750_p9), 523264  }
  0x24   : > { %s4578_s10 = sld [smem:[#allocation16_spill]] (!%p750_p9)  ;;  %v869_v15 = vshrl.u32 (!%p750_p9), %v868_v14, 7  ;;  %3302 = vmatprep.mubr.msk.f32.mxu1 (!%p750_p9), %vm3751_vm1, %v3750_v7  ;;  %s4579_s7 = sld [smem:[#allocation21_spill]] (!%p750_p9) }
  0x25   : > { %s4539_s29 = smov (!%p750_p9), 112   ;;  %s4541_s0 = smov (!%p750_p9), 32  }
  0x26   : > { %v870_v16 = vsub.s32 (!%p750_p9), 0, %v869_v15  ;;  %v874_v18 = vsub.s32 (!%p750_p9), 1, %v869_v15  ;;  %s4532_s9 = smov (!%p750_p9), 48   ;;  %s4535_s4 = smov (!%p750_p9), 80  }
  0x27   : > { %s4588_s22 = sld [smem:[#allocation25_spill]] (!%p750_p9)  ;;  %s4590_s24 = smov (!%p750_p9), 112  }
  0x28   : > { %v859_v0 = vld [vmem:[%s4577_s1 + $0x8] sm:$0xff] (!%p750_p9)  ;;  %v861_v1 = vld [vmem:[%s4577_s1 + $0x18] sm:$0xff] (!%p750_p9)  ;;  %v858_v2 = vld [vmem:[%s4577_s1] sm:$0xff] (!%p750_p9)  ;;  %s4589_s28 = sld [smem:[#allocation17_spill]] (!%p750_p9) }
  0x29   : > { %v3465_v3 = vpack.c.bf16 (!%p750_p9), %v861_v1, %v859_v0  ;;  %v860_v4 = vld [vmem:[%s4577_s1 + $0x10] sm:$0xff] (!%p750_p9)  ;;  %v863_v5 = vld [vmem:[%s4577_s1 + $0x28] sm:$0xff] (!%p750_p9)  ;;  %v865_v6 = vld [vmem:[%s4577_s1 + $0x38] sm:$0xff] (!%p750_p9) }
  0x2a   : > { %v3467_v8 = vpack.c.bf16 %v860_v4, %v858_v2  ;;  %v3469_v9 = vpack.c.bf16 %v865_v6, %v863_v5  ;;  %v862_v10 = vld [vmem:[%s4577_s1 + $0x20] sm:$0xff]  ;;  %v864_v11 = vld [vmem:[%s4577_s1 + $0x30] sm:$0xff]  ;;  %s841_s27 = scalar_select %p840_p10, %s3921_s8, 1 }
  0x2b   : > { %3466 = vmatprep.subr.bf16.mxu0 %v3465_v3  ;;  %v3471_v12 = vpack.c.bf16 %v864_v11, %v862_v10  ;;  %v866_v17 = vld [vmem:[%s4579_s7] sm:$0x3]  ;;  %s4585_s1 = sld [smem:[#allocation23_spill]]  ;;  %s4591_s7 = smov 96  }
  0x2c   : > { %3468 = vmatpush1.bf16.msra.mxu0 %v3467_v8  ;;  %s3978_s5 = sshll.u32 %s841_s27, 3  ;;  %v871_v19 = vrot.slane %v866_v17, %v870_v16  ;;  %v875_v20 = vrot.slane %v866_v17, %v874_v18  ;;  %s4531_s27 = smov 64  }
  0x2d   : > { %3470 = vmatprep.subr.bf16.mxu0 %v3469_v9  ;;  %s843_s6 = scalar_lea.vmem %s4578_s10, %s3978_s5  ;;  %s4543_s10 = smov 16  }
  0x2e   : > { %v3984_v13 = vld [vmem:[%s843_s6] sm:$0xff]  ;;  %s4537_s6 = smov 96  }
  0x30   : > { %3472 = vmatpush1.bf16.msra.mxu0 %v3471_v12 }
  0x31   : > { %3295 = vmatprep.subr.mxu0 %v3750_v7 }
  0x33   : > { %3160 = vmatmul.mubr.msk.f32.vlgmr.msra.gmra.mrb[0].mxu0 %vm878_vm0, %v3984_v13 }
  0x34   : > { %3297 = vmatprep.mubr.msk.f32.mxu0 %vm3751_vm1, %v3750_v7 }
 0x106   : > { %v948_v21 = vpop.f32.mrb[0].mxu0 }
 0x107   : > { %v949_v22 = vadd.f32 %v948_v21, %v871_v19  ;;  %v950_v23 = vpop.f32.mrb[1].mxu0 }
 0x108   : > { %v3996_v24 = vadd.f32 %v950_v23, %v875_v20 }
 0x109   : > { %1131 = vrot.lane.b32.xlu1 %v949_v22, %s4539_s29  ;;  %966 = vrot.lane.b32.xlu0 %v949_v22, %s4531_s27  ;;  %s4580_s27 = sld [smem:[#allocation18_spill]] }
 0x10a   : > { %3301 = vmatpush3.msra.mxu1 %v3996_v24 }
 0x10b   : > { %3310 = vmatprep.subr.mxu1 %v3750_v7 }
 0x10d   : > { %1302 = vrot.lane.b32.xlu1 %v949_v22, %s4541_s0  ;;  %1133 = vrot.lane.b32.xlu0 %v949_v22, %s4532_s9  ;;  %s4584_s0 = smov 48  }
 0x10f   : > { %s851_s9 = scalar_lea.vmem %s4580_s27, %s3978_s5  ;;  %s4049_s27 = sand.u32 1, %s3740_s3  }
 0x110   : > { %v953_v32 = vld [vmem:[%s851_s9] sm:$0xff]  ;;  %s4534_s9 = sshll.u32 %s4049_s27, 5  ;;  %s847_s3 = scalar_lea.vmem %s4589_s28, %s3978_s5 }
 0x111   : > { %1470 = vrot.lane.b32.xlu1 %v949_v22, %s4543_s10  ;;  %1300 = vrot.lane.b32.xlu0 %v949_v22, %s4537_s6  ;;  %vm1043_vm3 = vcmp.gt.f32.partialorder %v953_v32, 0.5  ;;  %s4054_s30 = scalar_lea.vmem [#allocation4], %s4534_s9  ;;  %s4587_s10 = sld [smem:[#allocation24_spill]] }
 0x112   : > { %s4593_s28 = sld [smem:[#allocation19_spill]]  ;;  %s4595_s26 = sshll.u32 %s4049_s27, 5 }
 0x113   : > { %s4235_s23 = scalar_lea.vmem [#allocation6], %s4595_s26  ;;  %s2974_s9 = sshll.u32 %s4054_s30, 4  ;;  %s4373_s9 = int_to_ptr.vmem [resolvable:$true] %s2974_s9 }
 0x115   : > { %1468 = vrot.lane.b32.xlu0 %v949_v22, %s4535_s4 }
 0x17b   : > { %v1132_v25 = vpop.permute.xlu1 %1131  ;;  %v967_v26 = vpop.permute.xlu0 %966 }
 0x17c   : > { %3296 = vmatpush3.xpose.msk.msra.mxu0 %vm968_vm2, %v967_v26 }
 0x17d   : > { %3305 = vmatprep.subr.mxu0 %v3750_v7 }
 0x17f   : > { %3298 = vmatmul.mubr.msk.f32.vlgmr.msra.gmra.mrb[2].mxu0 %vm968_vm2, %v949_v22  ;;  %v1134_v27 = vpop.permute.xlu0 %1133  ;;  %v1303_v28 = vpop.permute.xlu1 %1302 }
 0x180   : > { %3306 = vmatpush3.xpose.msk.msra.mxu0 %vm968_vm2, %v1134_v27  ;;  %3307 = vmatprep.mubr.msk.f32.mxu0 %vm3751_vm1, %v3750_v7 }
 0x181   : > { %3315 = vmatprep.subr.mxu0 %v3750_v7 }
 0x183   : > { %3308 = vmatmul.mubr.msk.f32.vlgmr.msra.gmra.mrb[4].mxu0 %vm968_vm2, %v1132_v25  ;;  %v1301_v29 = vpop.permute.xlu0 %1300  ;;  %v1471_v30 = vpop.permute.xlu1 %1470  ;;  %v3759_v25 = vmov 0.0|0.0  }
 0x184   : > { %3316 = vmatpush3.xpose.msk.msra.mxu0 %vm968_vm2, %v1303_v28  ;;  %3317 = vmatprep.mubr.msk.f32.mxu0 %vm3751_vm1, %v3750_v7 }
 0x185   : > { %3325 = vmatprep.subr.mxu0 %v3750_v7 }
 0x187   : > { %3318 = vmatmul.mubr.msk.f32.vlgmr.msra.gmra.mrb[6].mxu0 %vm968_vm2, %v1301_v29  ;;  %v1469_v31 = vpop.permute.xlu0 %1468 }
 0x188   : > { %3326 = vmatpush3.xpose.msk.msra.mxu0 %vm968_vm2, %v1471_v30  ;;  %3327 = vmatprep.mubr.msk.f32.mxu0 %vm3751_vm1, %v3750_v7 }
 0x189   : > { %3473 = vmatprep.subr.bf16.mxu0 %v3759_v25 }
 0x18b   : > { %3328 = vmatmul.mubr.msk.f32.vlgmr.msra.gmra.mrb[8].mxu0 %vm968_vm2, %v1469_v31 }
 0x18c   : > { %3351 = vmatprep.mubr.msk.f32.mxu0 %vm3751_vm1, %v3750_v7 }
 0x252   : > { %v1039_v33 = vpop.f32.mrb[2].mxu0 }
 0x253   : > { %v1044_v34 = vsel %vm1043_vm3, -1e+09, %v1039_v33  ;;  %v3299_v35 = vpop.f32.mrb[3].mxu0 }
 0x254   : > { %v1046_v36 = vsel %vm1045_vm4, %v1044_v34, -inf }
 0x255   : > { %1047 = vmax.xlane.f32.xlu1 %v1046_v36 }
 0x256   : > { %v1205_v37 = vpop.f32.mrb[4].mxu0 }
 0x257   : > { %v1209_v38 = vsel %vm1043_vm3, -1e+09, %v1205_v37  ;;  %v3309_v39 = vpop.f32.mrb[5].mxu0 }
 0x258   : > { %v1210_v40 = vsel %vm1045_vm4, %v1209_v38, -inf }
 0x259   : > { %1211 = vmax.xlane.f32.xlu0 %v1210_v40 }
 0x25a   : > { %v1374_v41 = vpop.f32.mrb[6].mxu0 }
 0x25b   : > { %v1378_v42 = vsel %vm1043_vm3, -1e+09, %v1374_v41  ;;  %v3319_v43 = vpop.f32.mrb[7].mxu0 }
 0x25c   : > { %v1379_v44 = vsel %vm1045_vm4, %v1378_v42, -inf }
 0x25d   : > { %1380 = vmax.xlane.f32.xlu0 %v1379_v44 }
 0x25e   : > { %v1542_v45 = vpop.f32.mrb[8].mxu0 }
 0x25f   : > { %v1546_v46 = vsel %vm1043_vm3, -1e+09, %v1542_v45  ;;  %v3329_v47 = vpop.f32.mrb[9].mxu0 }
 0x260   : > { %v1547_v48 = vsel %vm1045_vm4, %v1546_v46, -inf }
 0x261   : > { %1548 = vmax.xlane.f32.xlu1 %v1547_v48 }
 0x2e2   : > { %v1048_v49 = vpop.xlane.xlu1 %1047 }
 0x2e3   : > { %v1049_v50 = vsub.f32 %v1044_v34, %v1048_v49  ;;  %v3176_v49 = vld [vmem:[%s4585_s1] ss:$0 sm:$0xff] }
 0x2e5   : > { %v1050_v51 = vmul.f32 1.442695, %v1049_v50 }
 0x2e6   : > { %v1212_v52 = vpop.xlane.xlu0 %1211 }
 0x2e7   : > { %3588 = vpow2.f32 %v1050_v51  ;;  %v1213_v53 = vsub.f32 %v1209_v38, %v1212_v52 }
 0x2e9   : > { %v1214_v54 = vmul.f32 1.442695, %v1213_v53 }
 0x2ea   : > { %v1381_v55 = vpop.xlane.xlu0 %1380 }
 0x2eb   : > { %3590 = vpow2.f32 %v1214_v54  ;;  %v1382_v56 = vsub.f32 %v1378_v42, %v1381_v55 }
 0x2ed   : > { %v1383_v57 = vmul.f32 1.442695, %v1382_v56 }
 0x2ee   : > { %v1549_v0 = vpop.xlane.xlu1 %1548 }
 0x2ef   : > { %3592 = vpow2.f32 %v1383_v57  ;;  %v1550_v1 = vsub.f32 %v1546_v46, %v1549_v0 }
 0x2f1   : > { %v3589_v58 = vpop.eup %3588  ;;  %v1551_v2 = vmul.f32 1.442695, %v1550_v1 }
 0x2f2   : > { %v1052_v59 = vsel %vm1045_vm4, %v3589_v58, 0.0 }
 0x2f3   : > { %1053 = vadd.xlane.f32.xlu0 %v1052_v59  ;;  %3594 = vpow2.f32 %v1551_v2 }
 0x2f5   : > { %v3591_v60 = vpop.eup %3590 }
 0x2f6   : > { %v1216_v61 = vsel %vm1045_vm4, %v3591_v60, 0.0 }
 0x2f7   : > { %1217 = vadd.xlane.f32.xlu1 %v1216_v61 }
 0x2f9   : > { %v3593_v62 = vpop.eup %3592 }
 0x2fa   : > { %v1385_v63 = vsel %vm1045_vm4, %v3593_v62, 0.0 }
 0x2fb   : > { %1386 = vadd.xlane.f32.xlu0 %v1385_v63 }
 0x2fd   : > { %v3595_v3 = vpop.eup %3594 }
 0x2fe   : > { %v1553_v4 = vsel %vm1045_vm4, %v3595_v3, 0.0 }
 0x308   : > { %1392 = vrot.lane.b32.xlu1 %v3996_v24, %s4537_s6  ;;  %s4583_s6 = smov 32  }
 0x311   : > { %1224 = vrot.lane.b32.xlu0 %v3996_v24, %s4539_s29  ;;  %s4582_s29 = smov 16  }
 0x32c   : > { %1554 = vadd.xlane.f32.xlu1 %v1553_v4 }
 0x33d   : > { %1560 = vrot.lane.b32.xlu1 %v3996_v24, %s4535_s4  ;;  %s4581_s4 = sld [smem:[#allocation22_spill]] }
 0x343   : > { %v954_v22 = vld [vmem:[%s4581_s4] sm:$0xff]  ;;  %v955_v23 = vld [vmem:[%s4581_s4 + $0x8] sm:$0xff]  ;;  %v956_v24 = vld [vmem:[%s4581_s4 + $0x10] sm:$0xff] }
 0x344   : > { %v3474_v26 = vpack.c.bf16 %v955_v23, %v954_v22  ;;  %v957_v27 = vld [vmem:[%s4581_s4 + $0x18] sm:$0xff]  ;;  %v958_v30 = vld [vmem:[%s4581_s4 + $0x20] sm:$0xff]  ;;  %v959_v31 = vld [vmem:[%s4581_s4 + $0x28] sm:$0xff] }
 0x345   : > { %v3477_v28 = vpack.c.bf16 %v957_v27, %v956_v24  ;;  %v3480_v33 = vpack.c.bf16 %v959_v31, %v958_v30  ;;  %v960_v35 = vld [vmem:[%s4581_s4 + $0x30] sm:$0xff]  ;;  %v961_v36 = vld [vmem:[%s4581_s4 + $0x38] sm:$0xff]  ;;  %s4586_s4 = sld [smem:[#allocation26_spill]]  ;;  %v3182_v23 = vld [vmem:[%s4508_s13] ss:$0 sm:$0xff] }
 0x346   : > { %3475 = vmatpush3.bf16.msra.mxu0 %v3474_v26  ;;  %v3483_v38 = vpack.c.bf16 %v961_v36, %v960_v35 }
 0x347   : > { %3476 = vmatprep.subr.bf16.mxu0 %v3759_v25 }
 0x34a   : > { %3478 = vmatpush3.bf16.msra.mxu0 %v3477_v28 }
 0x34b   : > { %3479 = vmatprep.subr.bf16.mxu0 %v3759_v25  ;;  %v1762_v61 = vld [vmem:[%s4586_s4 + $0x8] sm:$0xff]  ;;  %v1764_v63 = vld [vmem:[%s4586_s4 + $0x18] sm:$0xff] }
 0x34e   : > { %3481 = vmatpush3.bf16.msra.mxu0 %v3480_v33 }
 0x34f   : > { %3482 = vmatprep.subr.bf16.mxu0 %v3759_v25 }
 0x352   : > { %3484 = vmatpush3.bf16.msra.mxu0 %v3483_v38 }
 0x353   : > { %3376 = vmatprep.subr.mxu0 %v3750_v7 }
 0x380   : > { %v1054_v5 = vpop.xlane.xlu0 %1053 }
 0x381   : > { %3596 = vrcp.f32 %v1054_v5  ;;  %v3178_v5 = vld [vmem:[%s4587_s10] ss:$0 sm:$0xff]  ;;  %s4592_s10 = smov 80  }
 0x384   : > { %v1218_v6 = vpop.xlane.xlu1 %1217 }
 0x385   : > { %3598 = vrcp.f32 %v1218_v6 }
 0x388   : > { %v1387_v8 = vpop.xlane.xlu0 %1386  ;;  %v1393_v15 = vpop.permute.xlu1 %1392 }
 0x389   : > { %3600 = vrcp.f32 %v1387_v8  ;;  %v1845_v8 = vld [vmem:[%s4507_s12] sm:$0xff] }
 0x38b   : > { %v3597_v9 = vpop.eup %3596 }
 0x38c   : > { %v1225_v10 = vpop.permute.xlu0 %1224  ;;  %v1056_v11 = vmul.f32 %v3597_v9, %v3589_v58  ;;  %v1846_v9 = vld [vmem:[%s4507_s12 + $0x8] sm:$0xff] }
 0x38e   : > { %1057 = vst.msk [vmem:[%s4054_s30] sm:$0xff] %vm1045_vm4, %v1056_v11  ;;  %3303 = vmatmul.mubr.msk.f32.vlgmr.msra.gmra.mrb[0].mxu1 %vm1045_vm4, %v1056_v11 }
 0x38f   : > { %v3599_v12 = vpop.eup %3598  ;;  %3311 = vmatpush3.msra.mxu1 %v1225_v10  ;;  %3312 = vmatprep.mubr.msk.f32.mxu1 %vm3751_vm1, %v3750_v7  ;;  %v3179_v10 = vld [vmem:[%s4588_s22] ss:$0 sm:$0xff] }
 0x390   : > { %v1220_v14 = vmul.f32 %v3599_v12, %v3591_v60  ;;  %3320 = vmatprep.subr.mxu1 %v3750_v7  ;;  %v1761_v60 = vld [vmem:[%s4586_s4] sm:$0xff]  ;;  %v3492_v12 = vpack.c.bf16 %v1846_v9, %v1845_v8 }
 0x392   : > { %3166 = vst.msk [vmem:[%s4054_s30 + $0x8] sm:$0xff] %vm1045_vm4, %v1220_v14  ;;  %3313 = vmatmul.mubr.msk.f32.vlgmr.msra.gmra.mrb[2].mxu1 %vm1045_vm4, %v1220_v14 }
 0x393   : > { %v3601_v16 = vpop.eup %3600  ;;  %3321 = vmatpush3.msra.mxu1 %v1393_v15  ;;  %3322 = vmatprep.mubr.msk.f32.mxu1 %vm3751_vm1, %v3750_v7  ;;  %v1847_v15 = vld [vmem:[%s4507_s12 + $0x10] sm:$0xff] }
 0x394   : > { %v1389_v17 = vmul.f32 %v3601_v16, %v3593_v62  ;;  %3330 = vmatprep.subr.mxu1 %v3750_v7  ;;  %v3486_v62 = vpack.c.bf16 %v1762_v61, %v1761_v60  ;;  %v1848_v16 = vld [vmem:[%s4507_s12 + $0x18] sm:$0xff] }
 0x396   : > { %3170 = vst.msk [vmem:[%s4054_s30 + $0x10] sm:$0xff] %vm1045_vm4, %v1389_v17  ;;  %3323 = vmatmul.mubr.msk.f32.vlgmr.msra.gmra.mrb[4].mxu1 %vm1045_vm4, %v1389_v17  ;;  %v3495_v17 = vpack.c.bf16 %v1848_v16, %v1847_v15 }
 0x397   : > { %3332 = vmatprep.mubr.msk.f32.mxu1 %vm3751_vm1, %v3750_v7 }
 0x3b9   : > { %v1555_v18 = vpop.xlane.xlu1 %1554 }
 0x3ba   : > { %3602 = vrcp.f32 %v1555_v18  ;;  %v857_v18 = vld [vmem:[%s847_s3] sm:$0xff]  ;;  %s855_s3 = scalar_lea.vmem %s4593_s28, %s3978_s5  ;;  %s4594_s5 = smov 64  }
 0x3bd   : > { %v1561_v19 = vpop.permute.xlu1 %1560 }
 0x3be   : > { %3331 = vmatpush3.msra.mxu1 %v1561_v19  ;;  %v3180_v19 = vld [vmem:[%s4506_s11] ss:$0 sm:$0xff] }
 0x3bf   : > { %3485 = vmatprep.subr.bf16.mxu1 %v3759_v25 }
 0x3c4   : > { %v3603_v20 = vpop.eup %3602 }
 0x3c5   : > { %v1557_v21 = vmul.f32 %v3603_v20, %v3595_v3 }
 0x3c7   : > { %3174 = vst.msk [vmem:[%s4054_s30 + $0x18] sm:$0xff] %vm1045_vm4, %v1557_v21  ;;  %3333 = vmatmul.mubr.msk.f32.vlgmr.msra.gmra.mrb[6].mxu1 %vm1045_vm4, %v1557_v21 }
 0x3c8   : > { %3362 = vmatprep.mubr.msk.f32.mxu1 %vm3751_vm1, %v3750_v7  ;;  %3487 = vmatpush3.bf16.msra.mxu1 %v3486_v62 }
 0x3c9   : > { %3488 = vmatprep.subr.bf16.mxu1 %v3759_v25 }
 0x461   : > { %v1127_v29 = vpop.f32.mrb[0].mxu1 }
 0x462   : > { %v3304_v32 = vpop.f32.mrb[1].mxu1 }
 0x465   : > { %v1296_v34 = vpop.f32.mrb[2].mxu1 }
 0x466   : > { %1637 = vrot.lane.b32.xlu0 %v1296_v34, %s4582_s29  ;;  %v3314_v37 = vpop.f32.mrb[3].mxu1  ;;  %v1929_v34 = vld [vmem:[%s855_s3] sm:$0xff]  ;;  %s2942_s3 = sand.u32 1, %s3921_s8  }
 0x467   : > { %vm2017_vm7 = vcmp.gt.f32.partialorder %v1929_v34, 0.5  ;;  %v1934_v34 = vld [vmem:[%s4509_s14 + $0x20] sm:$0xff] }
 0x469   : > { %v1464_v39 = vpop.f32.mrb[4].mxu1 }
 0x46a   : > { %1641 = vrot.lane.b32.xlu1 %v1464_v39, %s4583_s6  ;;  %v3324_v40 = vpop.f32.mrb[5].mxu1 }
 0x49a   : > { %v1632_v41 = vpop.f32.mrb[6].mxu1 }
 0x49b   : > { %1645 = vrot.lane.b32.xlu0 %v1632_v41, %s4584_s0  ;;  %v3334_v42 = vpop.f32.mrb[7].mxu1 }
 0x4d8   : > { %v1638_v43 = vpop.permute.xlu0 %1637 }
 0x4d9   : > { %v1648_v45 = vsel %vm968_vm2, %v1127_v29, %v1638_v43 }
 0x4dc   : > { %v1642_v44 = vpop.permute.xlu1 %1641 }
 0x4dd   : > { %v1649_v46 = vsel %vm878_vm0, %v1648_v45, %v1642_v44 }
 0x50d   : > { %v1646_v47 = vpop.permute.xlu0 %1645 }
 0x50e   : > { %v1651_v48 = vsel %vm1650_vm5, %v1649_v46, %v1646_v47 }
 0x50f   : > { %3352 = vmatmul.mubr.msk.f32.vlgmr.msra.gmra.mrb[10].mxu0 %vm1658_vm6, %v1651_v48 }
 0x510   : > { %3378 = vmatprep.mubr.msk.f32.mxu0 %vm3751_vm1, %v3750_v7 }
 0x5e2   : > { %v1728_v50 = vpop.f32.mrb[10].mxu0 }
 0x5e3   : > { %v1729_v51 = vadd.f32 %v3176_v49, %v1728_v50  ;;  %v3353_v52 = vpop.f32.mrb[11].mxu0 }
 0x5e5   : > { %v1732_v53 = vadd.f32 %v1729_v51, %v3984_v13  ;;  %v1763_v13 = vld [vmem:[%s4586_s4 + $0x10] sm:$0xff] }
 0x5e6   : > { %v3489_v0 = vpack.c.bf16 %v1764_v63, %v1763_v13 }
 0x5e7   : > { %v1733_v54 = vsel %vm878_vm0, %v1732_v53, 0.0 }
 0x5e8   : > { %1734 = vadd.xlane.f32.xlu1 %v1733_v54  ;;  %3490 = vmatpush3.bf16.msra.mxu1 %v3489_v0 }
 0x5e9   : > { %3491 = vmatprep.subr.bf16.mxu1 %v3759_v25 }
 0x675   : > { %v1735_v55 = vpop.xlane.xlu1 %1734 }
 0x676   : > { %v1737_v56 = vmul.f32 0.03125, %v1735_v55 }
 0x678   : > { %v1738_v57 = vsub.f32 %v1732_v53, %v1737_v56 }
 0x67a   : > { %v1739_v58 = vmul.f32 %v1738_v57, %v1738_v57 }
 0x67c   : > { %v1740_v59 = vsel %vm878_vm0, %v1739_v58, 0.0 }
 0x67d   : > { %1741 = vadd.xlane.f32.xlu0 %v1740_v59 }
 0x70a   : > { %v1742_v1 = vpop.xlane.xlu0 %1741 }
 0x70b   : > { %v1743_v2 = vmul.f32 0.03125, %v1742_v1 }
 0x70d   : > { %v1744_v3 = vadd.f32 1e-05, %v1743_v2 }
 0x70f   : > { %3604 = vrsqrt.f32 %v1744_v3 }
 0x719   : > { %v3605_v4 = vpop.eup %3604 }
 0x71a   : > { %v1746_v6 = vmul.f32 %v3605_v4, %v1738_v57 }
 0x71c   : > { %v1753_v11 = vmul.f32 %v3178_v5, %v1746_v6 }
 0x71e   : > { %v4149_v14 = vadd.f32 %v3179_v10, %v1753_v11 }
 0x720   : > { %3363 = vmatmul.mubr.msk.f32.vlgmr.msra.gmra.mrb[8].mxu1 %vm878_vm0, %v4149_v14 }
 0x721   : > { %3493 = vmatpush3.bf16.msra.mxu1 %v3492_v12  ;;  %3373 = vmatprep.mubr.msk.f32.mxu1 %vm3751_vm1, %v3750_v7 }
 0x722   : > { %3494 = vmatprep.subr.bf16.mxu1 %v3759_v25 }
 0x725   : > { %3496 = vmatpush3.bf16.msra.mxu1 %v3495_v17 }
 0x726   : > { %3381 = vmatprep.subr.mxu1 %v3750_v7 }
 0x728   : > { %3374 = vmatmul.mubr.msk.f32.vlgmr.msra.gmra.mrb[10].mxu1 %vm878_vm0, %v857_v18 }
 0x729   : > { %3383 = vmatprep.mubr.msk.f32.mxu1 %vm3751_vm1, %v3750_v7 }
 0x7f3   : > { %v1841_v20 = vpop.f32.mrb[8].mxu1 }
 0x7f4   : > { %v1842_v21 = vadd.f32 %v3180_v19, %v1841_v20  ;;  %v3364_v22 = vpop.f32.mrb[9].mxu1 }
 0x7f6   : > { %2107 = vrot.lane.b32.xlu1 %v1842_v21, %s4590_s24 }
 0x7fb   : > { %v1925_v24 = vpop.f32.mrb[10].mxu1 }
 0x7fc   : > { %v4177_v26 = vadd.f32 %v3182_v23, %v1925_v24  ;;  %v3375_v27 = vpop.f32.mrb[11].mxu1 }
 0x7fd   : > { %v1931_v27 = vld [vmem:[%s4509_s14 + $0x8] sm:$0xff] }
 0x7fe   : > { %2277 = vrot.lane.b32.xlu1 %v4177_v26, %s4591_s7  ;;  %2109 = vrot.lane.b32.xlu0 %v4177_v26, %s4590_s24 }
 0x7ff   : > { %3377 = vmatpush3.xpose.msk.msra.mxu0 %vm968_vm2, %v4177_v26 }
 0x800   : > { %3386 = vmatprep.subr.mxu0 %v3750_v7 }
 0x802   : > { %3379 = vmatmul.mubr.msk.f32.vlgmr.msra.gmra.mrb[12].mxu0 %vm968_vm2, %v1842_v21  ;;  %2445 = vrot.lane.b32.xlu1 %v4177_v26, %s4592_s10 }
 0x803   : > { %2275 = vrot.lane.b32.xlu0 %v1842_v21, %s4591_s7  ;;  %3388 = vmatprep.mubr.msk.f32.mxu0 %vm3751_vm1, %v3750_v7  ;;  %s4375_s7 = scalar_lea.sflag [#allocation5], %s2942_s3 }
 0x807   : > { %2443 = vrot.lane.b32.xlu0 %v1842_v21, %s4592_s10  ;;  %s3626_s10 = scalar_lea.vmem %s4373_s9, 512 }
 0x808   : > { %p3627_p11 = scmp.ne.s32.totalorder %s4373_s9, %s3626_s10 }
 0x80a   : > { %p3628_p12 = pnand %p3627_p11, %p3940_p5 }
 0x80c   : > { %p3629_p13 = pneg %p3628_p12 }
 0x868   : > { %v2108_v28 = vpop.permute.xlu1 %2107 }
 0x870   : > { %v2110_v29 = vpop.permute.xlu0 %2109  ;;  %v2278_v30 = vpop.permute.xlu1 %2277 }
 0x871   : > { %3387 = vmatpush3.xpose.msk.msra.mxu0 %vm968_vm2, %v2110_v29 }
 0x872   : > { %3396 = vmatprep.subr.mxu0 %v3750_v7 }
 0x874   : > { %3389 = vmatmul.mubr.msk.f32.vlgmr.msra.gmra.mrb[14].mxu0 %vm968_vm2, %v2108_v28  ;;  %v2446_v32 = vpop.permute.xlu1 %2445  ;;  %v1932_v28 = vld [vmem:[%s4509_s14 + $0x10] sm:$0xff] }
 0x875   : > { %v2276_v31 = vpop.permute.xlu0 %2275  ;;  %3397 = vmatpush3.xpose.msk.msra.mxu0 %vm968_vm2, %v2278_v30  ;;  %3398 = vmatprep.mubr.msk.f32.mxu0 %vm3751_vm1, %v3750_v7  ;;  %v1933_v30 = vld [vmem:[%s4509_s14 + $0x18] sm:$0xff] }
 0x876   : > { %3406 = vmatprep.subr.mxu0 %v3750_v7 }
 0x878   : > { %3399 = vmatmul.mubr.msk.f32.vlgmr.msra.gmra.mrb[16].mxu0 %vm968_vm2, %v2276_v31  ;;  %v3501_v31 = vpack.c.bf16 %v1933_v30, %v1932_v28 }
 0x879   : > { %3407 = vmatpush3.xpose.msk.msra.mxu0 %vm968_vm2, %v2446_v32  ;;  %3408 = vmatprep.mubr.msk.f32.mxu0 %vm3751_vm1, %v3750_v7  ;;  %v2444_v33 = vpop.permute.xlu0 %2443 }
 0x87a   : > { %3497 = vmatprep.subr.bf16.mxu0 %v3759_v25 }
 0x87c   : > { %3409 = vmatmul.mubr.msk.f32.vlgmr.msra.gmra.mrb[18].mxu0 %vm968_vm2, %v2444_v33 }
 0x87d   : > { %3432 = vmatprep.mubr.msk.f32.mxu0 %vm3751_vm1, %v3750_v7 }
 0x8d5   : > { %v2013_v35 = vpop.f32.mrb[12].mxu0 }
 0x8d6   : > { %v2018_v36 = vsel %vm2017_vm7, -1e+09, %v2013_v35  ;;  %v3380_v37 = vpop.f32.mrb[13].mxu0  ;;  %v1935_v35 = vld [vmem:[%s4509_s14 + $0x28] sm:$0xff] }
 0x8d7   : > { %v2019_v38 = vsel %vm1045_vm4, %v2018_v36, -inf  ;;  %v1936_v37 = vld [vmem:[%s4509_s14 + $0x30] sm:$0xff] }
 0x8d8   : > { %2020 = vmax.xlane.f32.xlu1 %v2019_v38  ;;  %v1937_v38 = vld [vmem:[%s4509_s14 + $0x38] sm:$0xff] }
 0x947   : > { %v2181_v39 = vpop.f32.mrb[14].mxu0 }
 0x948   : > { %v2185_v40 = vsel %vm2017_vm7, -1e+09, %v2181_v39  ;;  %v3390_v41 = vpop.f32.mrb[15].mxu0  ;;  %v3507_v39 = vpack.c.bf16 %v1937_v38, %v1936_v37 }
 0x949   : > { %v2186_v42 = vsel %vm1045_vm4, %v2185_v40, -inf }
 0x94a   : > { %2187 = vmax.xlane.f32.xlu0 %v2186_v42 }
 0x94b   : > { %v2349_v43 = vpop.f32.mrb[16].mxu0 }
 0x94c   : > { %v2353_v44 = vsel %vm2017_vm7, -1e+09, %v2349_v43  ;;  %v3400_v45 = vpop.f32.mrb[17].mxu0 }
 0x94d   : > { %v2354_v46 = vsel %vm1045_vm4, %v2353_v44, -inf }
 0x94e   : > { %2355 = vmax.xlane.f32.xlu0 %v2354_v46 }
 0x94f   : > { %v2517_v47 = vpop.f32.mrb[18].mxu0 }
 0x950   : > { %v2521_v48 = vsel %vm2017_vm7, -1e+09, %v2517_v47  ;;  %v3410_v49 = vpop.f32.mrb[19].mxu0 }
 0x951   : > { %v2522_v50 = vsel %vm1045_vm4, %v2521_v48, -inf }
 0x952   : > { %2523 = vmax.xlane.f32.xlu1 %v2522_v50 }
 0x963   : > { %2199 = vrot.lane.b32.xlu1 %v4177_v26, %s4584_s0 }
 0x965   : > { %v2021_v51 = vpop.xlane.xlu1 %2020 }
 0x966   : > { %v2022_v52 = vsub.f32 %v2018_v36, %v2021_v51  ;;  %v3504_v36 = vpack.c.bf16 %v1935_v35, %v1934_v34 }
 0x968   : > { %v2023_v53 = vmul.f32 1.442695, %v2022_v52  ;;  %v3199_v52 = vld [vmem:[%s4510_s15] ss:$0 sm:$0xff] }
 0x96a   : > { %3606 = vpow2.f32 %v2023_v53 }
 0x974   : > { %v3607_v54 = vpop.eup %3606 }
 0x975   : > { %v2025_v55 = vsel %vm1045_vm4, %v3607_v54, 0.0 }
 0x976   : > { %2026 = vadd.xlane.f32.xlu0 %v2025_v55 }
 0x98c   : > { %2031 = vrot.lane.b32.xlu0 %v4177_v26, %s4594_s5  ;;  %s3219_s5 = sshll.u32 %s3921_s8, 9 }
 0x98d   : > { %s4370_s1 = scalar_lea.hbm %s4520_s25, %s3219_s5 }
 0x9d7   : > { %v2188_v56 = vpop.xlane.xlu0 %2187 }
 0x9d8   : > { %v2189_v57 = vsub.f32 %v2185_v40, %v2188_v56 }
 0x9da   : > { %v2190_v58 = vmul.f32 1.442695, %v2189_v57 }
 0x9db   : > { %v2356_v59 = vpop.xlane.xlu0 %2355 }
 0x9dc   : > { %3608 = vpow2.f32 %v2190_v58  ;;  %v2357_v60 = vsub.f32 %v2353_v44, %v2356_v59 }
 0x9de   : > { %v2358_v61 = vmul.f32 1.442695, %v2357_v60 }
 0x9df   : > { %v2524_v62 = vpop.xlane.xlu1 %2523 }
 0x9e0   : > { %3610 = vpow2.f32 %v2358_v61  ;;  %v2525_v13 = vsub.f32 %v2521_v48, %v2524_v62 }
 0x9e2   : > { %v2526_v63 = vmul.f32 1.442695, %v2525_v13  ;;  %v2733_v13 = vld [vmem:[%s4513_s18] sm:$0xff] }
 0x9e3   : > { %v2200_v11 = vpop.permute.xlu1 %2199 }
 0x9e4   : > { %3612 = vpow2.f32 %v2526_v63  ;;  %v2734_v63 = vld [vmem:[%s4513_s18 + $0x8] sm:$0xff] }
 0x9e6   : > { %v3609_v0 = vpop.eup %3608 }
 0x9e7   : > { %v2192_v1 = vsel %vm1045_vm4, %v3609_v0, 0.0 }
 0x9e8   : > { %2193 = vadd.xlane.f32.xlu1 %v2192_v1  ;;  %v2736_v1 = vld [vmem:[%s4513_s18 + $0x18] sm:$0xff] }
 0x9ea   : > { %v3611_v2 = vpop.eup %3610 }
 0x9eb   : > { %v2360_v3 = vsel %vm1045_vm4, %v3611_v2, 0.0 }
 0x9ec   : > { %2361 = vadd.xlane.f32.xlu0 %v2360_v3 }
 0x9ee   : > { %v3613_v4 = vpop.eup %3612 }
 0x9ef   : > { %v2528_v5 = vsel %vm1045_vm4, %v3613_v4, 0.0 }
 0x9f0   : > { %2529 = vadd.xlane.f32.xlu1 %v2528_v5 }
 0xa01   : > { %2367 = vrot.lane.b32.xlu1 %v4177_v26, %s4583_s6 }
 0xa02   : > { %2535 = vrot.lane.b32.xlu0 %v4177_v26, %s4582_s29  ;;  %v1930_v26 = vld [vmem:[%s4509_s14] sm:$0xff] }
 0xa03   : > { %v2027_v6 = vpop.xlane.xlu0 %2026  ;;  %v3498_v29 = vpack.c.bf16 %v1931_v27, %v1930_v26  ;;  %v3203_v27 = vld [vmem:[%s4514_s19] ss:$0 sm:$0xff] }
 0xa04   : > { %3614 = vrcp.f32 %v2027_v6 }
 0xa05   : > { %3499 = vmatpush3.bf16.msra.mxu0 %v3498_v29 }
 0xa06   : > { %3500 = vmatprep.subr.bf16.mxu0 %v3759_v25 }
 0xa07   : > { %v2032_v8 = vpop.permute.xlu0 %2031 }
 0xa08   : > { %3382 = vmatpush3.msra.mxu1 %v2032_v8  ;;  %v3201_v8 = vld [vmem:[%s4511_s16] ss:$0 sm:$0xff] }
 0xa09   : > { %3391 = vmatprep.subr.mxu1 %v3750_v7  ;;  %3502 = vmatpush3.bf16.msra.mxu0 %v3501_v31 }
 0xa0a   : > { %3503 = vmatprep.subr.bf16.mxu0 %v3759_v25 }
 0xa0d   : > { %3505 = vmatpush3.bf16.msra.mxu0 %v3504_v36 }
 0xa0e   : > { %v3615_v9 = vpop.eup %3614  ;;  %3506 = vmatprep.subr.bf16.mxu0 %v3759_v25 }
 0xa0f   : > { %v2029_v10 = vmul.f32 %v3615_v9, %v3607_v54 }
 0xa11   : > { %2030 = vst.msk [vmem:[%s4235_s23] sm:$0xff] %vm1045_vm4, %v2029_v10  ;;  %3384 = vmatmul.mubr.msk.f32.vlgmr.msra.gmra.mrb[12].mxu1 %vm1045_vm4, %v2029_v10  ;;  %3508 = vmatpush3.bf16.msra.mxu0 %v3507_v39  ;;  %v2818_v10 = vld [vmem:[%s4515_s20] sm:$0xff] }
 0xa12   : > { %3392 = vmatpush3.msra.mxu1 %v2200_v11  ;;  %3393 = vmatprep.mubr.msk.f32.mxu1 %vm3751_vm1, %v3750_v7  ;;  %v2819_v11 = vld [vmem:[%s4515_s20 + $0x8] sm:$0xff] }
 0xa13   : > { %3401 = vmatprep.subr.mxu1 %v3750_v7 }
 0xa75   : > { %v2194_v12 = vpop.xlane.xlu1 %2193 }
 0xa76   : > { %3616 = vrcp.f32 %v2194_v12  ;;  %v3202_v12 = vld [vmem:[%s4512_s17] ss:$0 sm:$0xff] }
 0xa79   : > { %v2362_v15 = vpop.xlane.xlu0 %2361 }
 0xa7a   : > { %3618 = vrcp.f32 %v2362_v15 }
 0xa7d   : > { %v2530_v16 = vpop.xlane.xlu1 %2529  ;;  %v2536_v22 = vpop.permute.xlu0 %2535 }
 0xa7e   : > { %3620 = vrcp.f32 %v2530_v16  ;;  %v3516_v16 = vpack.c.bf16 %v2819_v11, %v2818_v10 }
 0xa80   : > { %v3617_v17 = vpop.eup %3616 }
 0xa81   : > { %v2196_v18 = vmul.f32 %v3617_v17, %v3609_v0  ;;  %v2368_v19 = vpop.permute.xlu1 %2367  ;;  %v3510_v0 = vpack.c.bf16 %v2734_v63, %v2733_v13 }
 0xa83   : > { %3189 = vst.msk [vmem:[%s4235_s23 + $0x8] sm:$0xff] %vm1045_vm4, %v2196_v18  ;;  %3394 = vmatmul.mubr.msk.f32.vlgmr.msra.gmra.mrb[14].mxu1 %vm1045_vm4, %v2196_v18  ;;  %v2820_v18 = vld [vmem:[%s4515_s20 + $0x10] sm:$0xff] }
 0xa84   : > { %v3619_v20 = vpop.eup %3618  ;;  %3402 = vmatpush3.msra.mxu1 %v2368_v19  ;;  %3403 = vmatprep.mubr.msk.f32.mxu1 %vm3751_vm1, %v3750_v7  ;;  %v2821_v19 = vld [vmem:[%s4515_s20 + $0x18] sm:$0xff] }
 0xa85   : > { %v2364_v21 = vmul.f32 %v3619_v20, %v3611_v2  ;;  %3411 = vmatprep.subr.mxu1 %v3750_v7  ;;  %v3519_v20 = vpack.c.bf16 %v2821_v19, %v2820_v18 }
 0xa87   : > { %3193 = vst.msk [vmem:[%s4235_s23 + $0x10] sm:$0xff] %vm1045_vm4, %v2364_v21  ;;  %3404 = vmatmul.mubr.msk.f32.vlgmr.msra.gmra.mrb[16].mxu1 %vm1045_vm4, %v2364_v21  ;;  %v2822_v21 = vld [vmem:[%s4515_s20 + $0x20] sm:$0xff] }
 0xa88   : > { %v3621_v23 = vpop.eup %3620  ;;  %3412 = vmatpush3.msra.mxu1 %v2536_v22  ;;  %3413 = vmatprep.mubr.msk.f32.mxu1 %vm3751_vm1, %v3750_v7  ;;  %v2823_v22 = vld [vmem:[%s4515_s20 + $0x28] sm:$0xff] }
 0xa89   : > { %v2532_v24 = vmul.f32 %v3621_v23, %v3613_v4  ;;  %3509 = vmatprep.subr.bf16.mxu1 %v3759_v25  ;;  %v3522_v23 = vpack.c.bf16 %v2823_v22, %v2822_v21 }
 0xa8b   : > { %3197 = vst.msk [vmem:[%s4235_s23 + $0x18] sm:$0xff] %vm1045_vm4, %v2532_v24  ;;  %3414 = vmatmul.mubr.msk.f32.vlgmr.msra.gmra.mrb[18].mxu1 %vm1045_vm4, %v2532_v24  ;;  %v2825_v24 = vld [vmem:[%s4515_s20 + $0x38] sm:$0xff] }
 0xa8c   : > { %3443 = vmatprep.mubr.msk.f32.mxu1 %vm3751_vm1, %v3750_v7  ;;  %3511 = vmatpush3.bf16.msra.mxu1 %v3510_v0 }
 0xa8d   : > { %3512 = vmatprep.subr.bf16.mxu1 %v3759_v25 }
 0xae4   : > { %v2103_v32 = vpop.f32.mrb[12].mxu1 }
 0xae5   : > { %v3385_v33 = vpop.f32.mrb[13].mxu1 }
 0xb56   : > { %v2271_v40 = vpop.f32.mrb[14].mxu1 }
 0xb57   : > { %2612 = vrot.lane.b32.xlu1 %v2271_v40, %s4582_s29  ;;  %v3395_v41 = vpop.f32.mrb[15].mxu1  ;;  %s3760_s29 = smov [#allocation4]  }
 0xb58   : > { %s3630_s22 = sshll.u32 %s3760_s29, 4  ;;  %s3631_s22 = int_to_ptr.vmem [resolvable:$false] %s3630_s22 }
 0xb59   : > { %p3633_p0 = scmp.lt.s32.totalorder %s4373_s9, %s3631_s22 }
 0xb5a   : > { %v2439_v42 = vpop.f32.mrb[16].mxu1 }
 0xb5b   : > { %2616 = vrot.lane.b32.xlu0 %v2439_v42, %s4583_s6  ;;  %v3405_v43 = vpop.f32.mrb[17].mxu1  ;;  %s3632_s6 = scalar_lea.vmem %s3631_s22, 1024 }
 0xb5c   : > { %p3634_p1 = scmp.lt.s32.totalorder %s3632_s6, %s3626_s10 }
 0xb5e   : > { %v2607_v44 = vpop.f32.mrb[18].mxu1  ;;  %p3635_p2 = por %p3634_p1, %p3633_p0 }
 0xb5f   : > { %2620 = vrot.lane.b32.xlu1 %v2607_v44, %s4584_s0  ;;  %v3415_v45 = vpop.f32.mrb[19].mxu1 }
 0xb60   : > { %p3636_p3 = pnand %p3635_p2, %p3629_p13 }
 0xbc9   : > { %v2613_v46 = vpop.permute.xlu1 %2612 }
 0xbca   : > { %v2623_v48 = vsel %vm968_vm2, %v2103_v32, %v2613_v46 }
 0xbcd   : > { %v2617_v47 = vpop.permute.xlu0 %2616 }
 0xbce   : > { %v2624_v49 = vsel %vm878_vm0, %v2623_v48, %v2617_v47 }
 0xbd1   : > { %v2621_v50 = vpop.permute.xlu1 %2620 }
 0xbd2   : > { %v2625_v51 = vsel %vm1650_vm5, %v2624_v49, %v2621_v50 }
 0xbd3   : > { %3433 = vmatmul.mubr.msk.f32.vlgmr.msra.gmra.mrb[20].mxu0 %vm1658_vm6, %v2625_v51 }
 0xca6   : > { %v2701_v53 = vpop.f32.mrb[20].mxu0 }
 0xca7   : > { %v2702_v54 = vadd.f32 %v3199_v52, %v2701_v53  ;;  %v3434_v55 = vpop.f32.mrb[21].mxu0 }
 0xca9   : > { %v2705_v56 = vadd.f32 %v2702_v54, %v4149_v14  ;;  %v2735_v14 = vld [vmem:[%s4513_s18 + $0x10] sm:$0xff] }
 0xcaa   : > { %v3513_v2 = vpack.c.bf16 %v2736_v1, %v2735_v14 }
 0xcab   : > { %v2706_v57 = vsel %vm878_vm0, %v2705_v56, 0.0 }
 0xcac   : > { %2707 = vadd.xlane.f32.xlu0 %v2706_v57  ;;  %3514 = vmatpush3.bf16.msra.mxu1 %v3513_v2 }
 0xcad   : > { %3515 = vmatprep.subr.bf16.mxu1 %v3759_v25 }
 0xd39   : > { %v2708_v58 = vpop.xlane.xlu0 %2707 }
 0xd3a   : > { %v2709_v59 = vmul.f32 0.03125, %v2708_v58 }
 0xd3c   : > { %v2710_v60 = vsub.f32 %v2705_v56, %v2709_v59 }
 0xd3e   : > { %v2711_v61 = vmul.f32 %v2710_v60, %v2710_v60 }
 0xd40   : > { %v2712_v62 = vsel %vm878_vm0, %v2711_v61, 0.0 }
 0xd41   : > { %2713 = vadd.xlane.f32.xlu1 %v2712_v62 }
 0xdce   : > { %v2714_v3 = vpop.xlane.xlu1 %2713 }
 0xdcf   : > { %v2715_v4 = vmul.f32 0.03125, %v2714_v3 }
 0xdd1   : > { %v2716_v5 = vadd.f32 1e-05, %v2715_v4 }
 0xdd3   : > { %3622 = vrsqrt.f32 %v2716_v5 }
 0xddd   : > { %v3623_v6 = vpop.eup %3622 }
 0xdde   : > { %v2718_v9 = vmul.f32 %v3623_v6, %v2710_v60 }
 0xde0   : > { %v2725_v15 = vmul.f32 %v3201_v8, %v2718_v9 }
 0xde2   : > { %v2732_v17 = vadd.f32 %v3202_v12, %v2725_v15 }
 0xde4   : > { %3444 = vmatmul.mubr.msk.f32.vlgmr.msra.gmra.mrb[20].mxu1 %vm878_vm0, %v2732_v17 }
 0xde5   : > { %3517 = vmatpush3.bf16.msra.mxu1 %v3516_v16  ;;  %3462 = vmatprep.mubr.msk.f32.mxu1 %vm3751_vm1, %v3750_v7  ;;  %v2824_v7 = vld [vmem:[%s4515_s20 + $0x30] sm:$0xff] }
 0xde6   : > { %3518 = vmatprep.subr.bf16.mxu1 %v3759_v25  ;;  %v3525_v26 = vpack.c.bf16 %v2825_v24, %v2824_v7 }
 0xde9   : > { %3520 = vmatpush3.bf16.msra.mxu1 %v3519_v20 }
 0xdea   : > { %3521 = vmatprep.subr.bf16.mxu1 %v3759_v25 }
 0xded   : > { %3523 = vmatpush3.bf16.msra.mxu1 %v3522_v23 }
 0xdee   : > { %3524 = vmatprep.subr.bf16.mxu1 %v3759_v25  ;;  %v3205_v25 = vld [vmem:[%s4516_s21] ss:$0 sm:$0xff] }
 0xdf1   : > { %3526 = vmatpush3.bf16.msra.mxu1 %v3525_v26 }
 0xeb7   : > { %v2813_v28 = vpop.f32.mrb[20].mxu1 }
 0xeb8   : > { %v2814_v29 = vadd.f32 %v3203_v27, %v2813_v28  ;;  %v3445_v30 = vpop.f32.mrb[21].mxu1 }
 0xeba   : > { %v2817_v31 = vmax.f32 %v2814_v29, 0.0 }
 0xebc   : > { %3463 = vmatmul.mubr.msk.f32.vlgmr.msra.gmra.mrb[22].mxu1 %vm1658_vm6, %v2817_v31 }
 0xf8f   : > { %v2902_v32 = vpop.f32.mrb[22].mxu1 }
 0xf90   : > { %v2903_v33 = vadd.f32 %v3205_v25, %v2902_v32  ;;  %v3464_v34 = vpop.f32.mrb[23].mxu1 }
 0xf92   : > { %v2906_v35 = vadd.f32 %v2903_v33, %v2732_v17 }
 0xf94   : > { %v2909_v36 = vsel %vm878_vm0, %v2906_v35, 0.0 }
 0xf95   : > { %2910 = vadd.xlane.f32.xlu0 %v2909_v36 }
0x1022   : > { %v2911_v37 = vpop.xlane.xlu0 %2910 }
0x1023   : > { %v2912_v38 = vmul.f32 0.03125, %v2911_v37 }
0x1025   : > { %v4358_v39 = vsub.f32 %v2906_v35, %v2912_v38 }
0x1027   : > { %v2914_v40 = vmul.f32 %v4358_v39, %v4358_v39 }
0x1029   : > { %v2915_v41 = vsel %vm878_vm0, %v2914_v40, 0.0 }
0x102a   : > { %2916 = vadd.xlane.f32.xlu0 %v2915_v41 }
0x102b   : > { %3639 = shalt.err (!%p3636_p3)
}
0x102c   : > { %s3640_s30 = scalar_lea.hbm %s4370_s1, 512  ;;  %s3644_s28 = scalar_lea.hbm %s4520_s25, 1024 }
0x102d   : > { %p3641_p4 = scmp.ne.s32.totalorder %s4370_s1, %s3640_s30  ;;  %p3645_p9 = scmp.lt.u32.totalorder %s4370_s1, %s4520_s25 }
0x102e   : > { %p3646_p10 = scmp.lt.u32.totalorder %s3644_s28, %s3640_s30  ;;  %p3648_p12 = scmp.lt.u32.totalorder %s3640_s30, %s4370_s1 }
0x102f   : > { %p3642_p7 = pnand %p3641_p4, %p3940_p5 }
0x1030   : > { %p3647_p11 = por %p3646_p10, %p3645_p9 }
0x1031   : > { %p3643_p8 = pneg %p3642_p7 }
0x1032   : > { %p3649_p13 = por %p3648_p12, %p3647_p11 }
0x1034   : > { %p3650_p0 = pnand %p3649_p13, %p3643_p8 }
0x1036   : > { %3653 = shalt.err (!%p3650_p0)
}
0x1037   : > { %s3761_s24 = smov 128   ;;  %s3762_s10 = smov 8  }
0x1038   : > { %3528 = dma.vmem_to_hbm [thread:$0]  (%p3940_p5), %s4373_s9, 512, %s4370_s1, %s4375_s7, %s3761_s24, %s3761_s24, %s3762_s10  }
0x1039   : > { %s4596_s6 = sld [smem:[#allocation30_spill]]  ;;  %s2990_s0 = sshll.u32 %s4235_s23, 4  ;;  %s4410_s0 = int_to_ptr.vmem [resolvable:$true] %s2990_s0 }
0x103a   : > { %s3654_s4 = scalar_lea.vmem %s4410_s0, 512  ;;  %s3763_s28 = smov [#allocation6]  }
0x103b   : > { %p3655_p1 = scmp.ne.s32.totalorder %s4410_s0, %s3654_s4  ;;  %s3658_s3 = sshll.u32 %s3763_s28, 4  ;;  %s3659_s3 = int_to_ptr.vmem [resolvable:$false] %s3658_s3 }
0x103c   : > { %s3660_s1 = scalar_lea.vmem %s3659_s3, 1024  ;;  %p3661_p4 = scmp.lt.s32.totalorder %s4410_s0, %s3659_s3 }
0x103d   : > { %p3656_p2 = pnand %p3655_p1, %p3940_p5  ;;  %p3662_p7 = scmp.lt.s32.totalorder %s3660_s1, %s3654_s4 }
0x103f   : > { %s4407_s30 = scalar_lea.hbm %s4596_s6, %s3219_s5  ;;  %p3657_p3 = pneg %p3656_p2 }
0x1040   : > { %p3663_p8 = por %p3662_p7, %p3661_p4 }
0x1042   : > { %p3664_p9 = pnand %p3663_p8, %p3657_p3 }
0x1044   : > { %3667 = shalt.err (!%p3664_p9)
}
0x1045   : > { %s3668_s23 = scalar_lea.hbm %s4407_s30, 512  ;;  %s3672_s26 = scalar_lea.hbm %s4596_s6, 1024 }
0x1046   : > { %p3669_p10 = scmp.ne.s32.totalorder %s4407_s30, %s3668_s23  ;;  %p3673_p13 = scmp.lt.u32.totalorder %s4407_s30, %s4596_s6 }
0x1047   : > { %p3674_p0 = scmp.lt.u32.totalorder %s3672_s26, %s3668_s23  ;;  %p3676_p2 = scmp.lt.u32.totalorder %s3668_s23, %s4407_s30 }
0x1048   : > { %p3670_p11 = pnand %p3669_p10, %p3940_p5 }
0x1049   : > { %p3675_p1 = por %p3674_p0, %p3673_p13 }
0x104a   : > { %p3671_p12 = pneg %p3670_p11 }
0x104b   : > { %p3677_p3 = por %p3676_p2, %p3675_p1 }
0x104d   : > { %p3678_p4 = pnand %p3677_p3, %p3671_p12 }
0x104f   : > { %3681 = shalt.err (!%p3678_p4)
}
0x1050   : > { %3529 = dma.vmem_to_hbm [thread:$0]  (%p3940_p5), %s4410_s0, 512, %s4407_s30, %s4375_s7, %s3761_s24, %s3761_s24, %s3762_s10  }
0x1051   : > { %s3153_s4 = sshll.u32 %s4049_s27, 3  ;;  %s4597_s1 = sld [smem:[#allocation27_spill]] }
0x1052   : > { %s4598_s9 = sld [smem:[#allocation28_spill]]  ;;  %s3212_s26 = sshll.u32 %s3921_s8, 7 }
0x1053   : > { %s825_s7 = scalar_lea.vmem [#allocation2], %s3153_s4  ;;  %s4599_s0 = sld [smem:[#allocation29_spill]] }
0x1054   : > { %s2961_s24 = sshll.u32 %s825_s7, 4  ;;  %s2938_s22 = scalar_lea.sflag [#allocation3], %s4049_s27  ;;  %s4451_s24 = int_to_ptr.vmem [resolvable:$true] %s2961_s24 }
0x1055   : > { %s3682_s28 = scalar_lea.vmem %s4451_s24, 128  ;;  %s3764_s8 = smov [#allocation2]  }
0x1056   : > { %p3683_p7 = scmp.ne.s32.totalorder %s4451_s24, %s3682_s28  ;;  %s3686_s4 = sshll.u32 %s3764_s8, 4  ;;  %s3687_s4 = int_to_ptr.vmem [resolvable:$false] %s3686_s4 }
0x1057   : > { %v3207_v46 = vld [vmem:[%s4597_s1] ss:$0 sm:$0xff]  ;;  %s3688_s3 = scalar_lea.vmem %s3687_s4, 256  ;;  %p3689_p10 = scmp.lt.s32.totalorder %s4451_s24, %s3687_s4 }
0x1058   : > { %v3208_v48 = vld [vmem:[%s4598_s9] ss:$0 sm:$0xff]  ;;  %p3684_p8 = pnand %p3683_p7, %p3940_p5  ;;  %p3690_p11 = scmp.lt.s32.totalorder %s3688_s3, %s3682_s28 }
0x1059   : > { %s4449_s29 = scalar_lea.hbm %s4599_s0, %s3212_s26 }
0x105a   : > { %p3685_p9 = pneg %p3684_p8  ;;  %p3691_p12 = por %p3690_p11, %p3689_p10 }
0x105c   : > { %p3692_p13 = pnand %p3691_p12, %p3685_p9 }
0x10b7   : > { %v2917_v42 = vpop.xlane.xlu0 %2916 }
0x10b8   : > { %v2918_v43 = vmul.f32 0.03125, %v2917_v42 }
0x10ba   : > { %v2919_v44 = vadd.f32 1e-05, %v2918_v43 }
0x10bc   : > { %3624 = vrsqrt.f32 %v2919_v44 }
0x10c6   : > { %v3625_v45 = vpop.eup %3624 }
0x10c7   : > { %v2921_v47 = vmul.f32 %v3625_v45, %v4358_v39 }
0x10c9   : > { %v2928_v49 = vmul.f32 %v3207_v46, %v2921_v47 }
0x10cb   : > { %v2935_v50 = vadd.f32 %v3208_v48, %v2928_v49 }
0x10cd   : > { %2936 = vst.msk [vmem:[%s825_s7] sm:$0xff] %vm878_vm0, %v2935_v50 }
0x10ce   : > { %3695 = shalt.err (!%p3692_p13)
}
0x10cf   : > { %s3696_s27 = scalar_lea.hbm %s4449_s29, 128  ;;  %s3700_s5 = scalar_lea.hbm %s4599_s0, 256 }
0x10d0   : > { %p3697_p0 = scmp.ne.s32.totalorder %s4449_s29, %s3696_s27  ;;  %p3701_p3 = scmp.lt.u32.totalorder %s4449_s29, %s4599_s0 }
0x10d1   : > { %p3702_p4 = scmp.lt.u32.totalorder %s3700_s5, %s3696_s27  ;;  %p3704_p8 = scmp.lt.u32.totalorder %s3696_s27, %s4449_s29 }
0x10d2   : > { %p3698_p1 = pnand %p3697_p0, %p3940_p5 }
0x10d3   : > { %p3703_p7 = por %p3702_p4, %p3701_p3 }
0x10d4   : > { %p3699_p2 = pneg %p3698_p1 }
0x10d5   : > { %p3705_p9 = por %p3704_p8, %p3703_p7 }
0x10d7   : > { %p3706_p10 = pnand %p3705_p9, %p3699_p2 }
0x10d9   : > { %3709 = shalt.err (!%p3706_p10)
}
0x10da   : > { %3527 = dma.vmem_to_hbm [thread:$0]  (%p3940_p5), %s4451_s24, 128, %s4449_s29, %s2938_s22  }
0x10db PF: > { %s4600_s7 = sld [smem:[#allocation12_spill]]  ;;  %s4601_s10 = sld [smem:[#allocation9_spill]] }
0x10e1   : > { %p3543_p11 = scmp.ge.s32.totalorder %s4600_s7, 2  ;;  %s3005_s28 = sand.u32 1, %s4601_s10  }
0x10e2   : > { %s3006_s8 = scalar_lea.sflag [#allocation3], %s3005_s28 }
0x10e3   : > { %p3534_p12 = pnand %p3543_p11, %p3944_p6 }
0x10e5   : > { %3727 = dma.done.wait (!%p3534_p12), %s3006_s8, 128  }
0x10e6   : > { %3729 = vsyncadd (!%p3534_p12), %s3006_s8, 4294967168  ;;  %s4603_s4 = sadd.s32 4294967294, %s4600_s7  }
0x10e7   : > { %s3014_s3 = sand.u32 1, %s4603_s4  }
0x10e8   : > { %s3015_s27 = scalar_lea.sflag [#allocation5], %s3014_s3 }
0x10e9   : > { %3731 = dma.done.wait (!%p3534_p12), %s3015_s27, 1024  }
0x10ea   : > { %3733 = vsyncadd (!%p3534_p12), %s3015_s27, 4294966272  ;;  %s4604_s28 = sld [smem:[#allocation13_spill]]  ;;  %s4605_s27 = sld [smem:[#allocation10_spill]] }
0x10eb   : > { %s4606_s3 = sld [smem:[#allocation11_spill]]  ;;  %s4607_s7 = sld [smem:[#allocation14_spill]] }
0x10f0   : > { %p40_p5 = scmp.ge.s32.totalorder %s4604_s28, 4  }
0x10f2   :  { %42 = sbr.rel (!%p40_p5) target bundleno = 21 (0x15), region = 198 }
0x10f9   :  { %3029 = vsyncpa [#allocation3], 1 }
0x10fa   :  { %3031 = vsyncpa [#allocation3 + $0x1], 1 }
0x10fb   :  { %3032 = vsyncpa [#allocation5], 1 }
0x10fc   :  { %3034 = vsyncpa [#allocation5 + $0x1], 1 }

</bundles_post_ra>
